<compile_context>
chip_gen: v7x
topology: tpu7x:2x2x1
jax: 0.10.0
libtpu: 0.0.40
codegen_flags: <defaults>
</compile_context>

<pallas_src>
import functools

import jax
import jax.numpy as jnp
import numpy as np
from jax.experimental import pallas as pl
from jax.experimental.pallas import tpu as pltpu


# ----------------------------------------------------------------------------
# Kernel
# ----------------------------------------------------------------------------
def _make_st_gcn_kernel(K, kt, V, Nb, Cinp, Cout, TV, roll_sign):
    """Builds the kernel body; all arguments are static Python ints."""
    pad = (kt - 1) // 2

    def kernel(x_ref, adj_ref, wcat_ref, b1f_ref, wt_ref, wr_ref, bfin_ref,
               out_ref):
        # x_ref   : (Nb, Cinp, TV)    bf16  Nb batch samples, NCTV flattened (T,V)
        # adj_ref : (2K, TV, TV)      bf16  block-diag [A + K_A ; A_learn] per k
        # wcat_ref: (Cout, 2K*Cinp)   bf16  fused gcn / gcn_self 1x1 convs (BN1-scaled)
        # b1f_ref : (Cout, TV)        f32   conv bias folded through adjacency + BN1
        # wt_ref  : (kt, Cout, Cout)  bf16  temporal taps (BN2-scaled)
        # wr_ref  : (Cout, Cinp)      bf16  residual 1x1 conv (BN folded)
        # bfin_ref: (Cout, 1)         f32   s2*bt + b2 + residual bias
        # out_ref : (Nb, Cout, TV)
        x = x_ref[...]                                    # bf16
        x2 = x.reshape(Nb * Cinp, TV)                     # free merge (Cinp % 8 == 0)

        # ---- dominant (TV,TV) graph matmuls: Cin-first ordering, batch+channel
        #      stacked along sublanes; the adjacency operand is batch-shared ----
        prods = [jnp.dot(x2, adj_ref[p], preferred_element_type=jnp.float32)
                 for p in range(2 * K)]                   # each (Nb*Cinp, TV) f32

        wcat = wcat_ref[...]
        b1f = b1f_ref[...]
        wt = wt_ref[...]
        wr = wr_ref[...]
        bfin = bfin_ref[...]

        # temporal boundary masks (zero-padding of the (kt,1) conv), hoisted
        col = jax.lax.broadcasted_iota(jnp.int32, (Cout, TV), 1)
        masks = []
        for dt in range(kt):
            d = dt - pad
            if d == 0:
                masks.append(None)
            else:
                lo = max(0, -d * V)
                hi = min(TV, TV - d * V)
                masks.append((col >= lo) & (col < hi))

        for n in range(Nb):                               # Nb is small & static
            r0, r1 = n * Cinp, (n + 1) * Cinp             # 8-row aligned sample slice
            xcat = jnp.concatenate([pr[r0:r1, :] for pr in prods], axis=0)
            xcat = xcat.astype(jnp.bfloat16)              # (2K*Cinp, TV)

            # fused 1x1 convolutions (+ adjacency-folded bias) + BN1 + ReLU
            z = jnp.dot(wcat, xcat, preferred_element_type=jnp.float32) + b1f
            z = jnp.maximum(z, 0.0)                       # (Cout, TV) f32

            # temporal (kt,1) conv: lane roll + boundary mask instead of a
            # (TV,TV) 0/1 shift matmul; per-tap results accumulate in f32.
            acc = jnp.zeros((Cout, TV), jnp.float32)
            for dt in range(kt):
                d = dt - pad
                if d == 0:
                    zs = z
                else:
                    shift = (roll_sign * (-d) * V) % TV   # static, non-negative
                    zs = pltpu.roll(z, shift, axis=1)
                    zs = jnp.where(masks[dt], zs, 0.0)
                acc = acc + jnp.dot(wt[dt], zs.astype(jnp.bfloat16),
                                    preferred_element_type=jnp.float32)

            # residual 1x1 conv (BN folded) + folded trailing biases + final ReLU
            res = jnp.dot(wr, x[n], preferred_element_type=jnp.float32)
            out_ref[n] = jnp.maximum(acc + res + bfin, 0.0).astype(out_ref.dtype)

    return kernel


@functools.lru_cache(maxsize=None)
def _probe_roll_convention():
    """pltpu.roll is expected to match jnp.roll (out[i] = in[(i - shift) % n]).
    Probe once with a trivial kernel so the temporal-shift direction can never
    silently flip; returns +1 for the jnp.roll convention, -1 otherwise."""
    xs = np.arange(8 * 128, dtype=np.float32).reshape(8, 128)

    def k(x_ref, o_ref):
        o_ref[...] = pltpu.roll(x_ref[...], 3, axis=1)

    try:
        y = np.asarray(pl.pallas_call(
            k, out_shape=jax.ShapeDtypeStruct((8, 128), jnp.float32))(jnp.asarray(xs)))
        if np.array_equal(y, np.roll(xs, -3, axis=1)):
            return -1                                     # out[i] = in[(i + shift) % n]
    except Exception:                                     # fall back to the expected default
        pass
    return 1


# ----------------------------------------------------------------------------
# Parameter folding (run once per parameter update, NOT per forward call)
# ----------------------------------------------------------------------------
def precompute_st_gcn_constants(A, KA, AL, Wg, bg, Ws, bs, s1, b1, Wt, bt,
                                s2, b2, Wrf, brf, T):
    K, V, _ = A.shape
    KCout, Cin = Wg.shape
    Cout = KCout // K
    kt = Wt.shape[2]
    TV = T * V
    Cinp = -(-Cin // 8) * 8                               # pad channels to a sublane multiple

    bf16 = lambda a: a.astype(jnp.bfloat16)

    # Block-diagonal adjacencies over time (A and K_A share the same conv -> folded);
    # gcn and gcn_self branches are concatenated into one (2K, TV, TV) operand.
    eyeT = jnp.eye(T, dtype=jnp.float32)

    def blockdiag(M):                                     # (K,V,V) -> (K,TV,TV)
        return (eyeT[None, :, None, :, None] * M[:, None, :, None, :]
                ).reshape(K, TV, TV)

    Adjcat = bf16(jnp.concatenate([blockdiag(A + KA), blockdiag(AL)], axis=0))

    # 1x1 conv weights -> (Cout, 2K*Cinp), channel-padded, BN1 scale folded in.
    def regroup(W):                                       # (K*Cout, Cin) -> (Cout, K*Cinp)
        Wp = jnp.pad(W, ((0, 0), (0, Cinp - Cin)))
        return jnp.transpose(Wp.reshape(K, Cout, Cinp), (1, 0, 2)).reshape(Cout, K * Cinp)

    Wcat = bf16(s1[:, None] * jnp.concatenate([regroup(Wg), regroup(Ws)], axis=1))

    # Conv biases folded through the adjacency column-sums, then through BN1.
    colA = (A + KA).sum(axis=1)                           # (K, V): sum_v Adj[k, v, w]
    colL = AL.sum(axis=1)
    bias_adj = (jnp.einsum("kc,kw->cw", bg.reshape(K, Cout), colA)
                + jnp.einsum("kc,kw->cw", bs.reshape(K, Cout), colL))  # (Cout, V)
    b1f = s1[:, None] * jnp.tile(bias_adj, (1, T)) + b1[:, None]       # (Cout, TV)

    # Temporal taps with BN2 scale folded; all trailing biases folded into one.
    WtTf = bf16(s2[None, :, None] * jnp.transpose(Wt, (2, 0, 1)))      # (kt, Cout, Cout)
    bfin = (s2 * bt + b2 + brf)[:, None]                               # (Cout, 1)
    Wrf_p = bf16(jnp.pad(Wrf, ((0, 0), (0, Cinp - Cin))))              # (Cout, Cinp)

    return dict(Adjcat=Adjcat, Wcat=Wcat, b1f=b1f, WtTf=WtTf,
                Wrf=Wrf_p, bfin=bfin)


# ----------------------------------------------------------------------------
# Forward wrapper
# ----------------------------------------------------------------------------
def st_gcn_forward(x_nctv, consts, A_learn, *, batch_block=2,
                   out_dtype=jnp.float32):
    """x_nctv: (N, Cin, T, V) float32 (PyTorch layout). Returns (out, A_learn)."""
    N, Cin, T, V = x_nctv.shape
    twoK, TV, _ = consts["Adjcat"].shape
    K = twoK // 2
    assert TV == T * V
    Cout = consts["Wcat"].shape[0]
    Cinp = consts["Wrf"].shape[1]
    kt = consts["WtTf"].shape[0]

    Nb = max(1, min(batch_block, N))
    Np = -(-N // Nb) * Nb

    # Contiguous reshape only (no HBM transpose); pad channels to a sublane
    # multiple and batch to a multiple of the batch block.
    x_flat = x_nctv.reshape(N, Cin, TV).astype(jnp.bfloat16)
    x_flat = jnp.pad(x_flat, ((0, Np - N), (0, Cinp - Cin), (0, 0)))

    roll_sign = _probe_roll_convention()
    kernel = _make_st_gcn_kernel(K, kt, V, Nb, Cinp, Cout, TV, roll_sign)

    def run(single_buffer_consts):
        def const_spec(shape):
            nd = len(shape)

            def index_map(n):
                return (0,) * nd

            if single_buffer_consts:
                # grid-constant operands: no need for the default double buffer
                return pl.BlockSpec(shape, index_map, pipeline_mode=pl.Buffered(1))
            return pl.BlockSpec(shape, index_map)

        grid_spec = pltpu.PrefetchScalarGridSpec(
            num_scalar_prefetch=0,
            grid=(Np // Nb,),
            in_specs=[
                pl.BlockSpec((Nb, Cinp, TV), lambda n: (n, 0, 0)),   # x (pipelined)
                const_spec((2 * K, TV, TV)),                         # adjacencies
                const_spec((Cout, 2 * K * Cinp)),                    # fused 1x1 convs
                const_spec((Cout, TV)),                              # folded BN1 bias
                const_spec((kt, Cout, Cout)),                        # temporal taps
                const_spec((Cout, Cinp)),                            # residual conv
                const_spec((Cout, 1)),                               # folded final bias
            ],
            out_specs=pl.BlockSpec((Nb, Cout, TV), lambda n: (n, 0, 0)),
        )
        return pl.pallas_call(
            kernel,
            out_shape=jax.ShapeDtypeStruct((Np, Cout, TV), out_dtype),
            grid_spec=grid_spec,
            compiler_params=pltpu.CompilerParams(
                # batch blocks are independent -> shard across v7x's two TCs
                dimension_semantics=("parallel",),
                # harmless at toy shapes; size to the real block footprint once
                # a realistic-T chunked variant is used (v5e default is 16 MiB).
                vmem_limit_bytes=32 * 1024 * 1024,
            ),
        )(x_flat, consts["Adjcat"], consts["Wcat"], consts["b1f"],
          consts["WtTf"], consts["Wrf"], consts["bfin"])

    try:
        out = run(True)
    except Exception:        # fallback if Buffered(1) is rejected by this build
        out = run(False)

    out = out[:N].reshape(N, Cout, T, V)
    return out, A_learn


# ----------------------------------------------------------------------------
# Pure-JAX reference (PyTorch NCTV layout, eval-mode BN, dropout = 0)
# ----------------------------------------------------------------------------
def reference(x, A, KA, AL, Wg, bg, Ws, bs, s1, b1, Wt, bt, s2, b2, Wrf, brf,
              K, Cout, kt):
    N, Cin, T, V = x.shape
    pad = (kt - 1) // 2

    def gcn(W, b, Adj):
        y = jnp.einsum("dc,nctv->ndtv", W, x) + b[None, :, None, None]
        y = y.reshape(N, K, Cout, T, V)
        return jnp.einsum("nkctv,kvw->nctw", y, Adj)

    x3a = gcn(Wg, bg, A) + gcn(Wg, bg, KA) + gcn(Ws, bs, AL)
    z = jnp.maximum(x3a * s1[None, :, None, None] + b1[None, :, None, None], 0.0)
    zp = jnp.pad(z, ((0, 0), (0, 0), (pad, pad), (0, 0)))
    tc = jnp.zeros((N, Cout, T, V), jnp.float32)
    for dt in range(kt):
        tc = tc + jnp.einsum("dc,nctv->ndtv", Wt[:, :, dt], zp[:, :, dt:dt + T, :])
    tc = tc + bt[None, :, None, None]
    y2 = tc * s2[None, :, None, None] + b2[None, :, None, None]
    res = jnp.einsum("dc,nctv->ndtv", Wrf, x) + brf[None, :, None, None]
    return jnp.maximum(y2 + res, 0.0)


if __name__ == "__main__":
    # N batch, Cin in_channels, Cout out_channels, T seq len, V graph nodes,
    # K = kernel_size[1] (spatial), kt = kernel_size[0] (temporal, odd).
    N, Cin, Cout, T, V, K, kt = 4, 4, 32, 8, 16, 3, 3
    eps = 1e-5

    key = jax.random.PRNGKey(0)
    ks = jax.random.split(key, 24)

    def nrm(k, shape, scale):
        return scale * jax.random.normal(k, shape, jnp.float32)

    x = nrm(ks[0], (N, Cin, T, V), 1.0)
    A = nrm(ks[1], (K, V, V), 0.3)
    KA = nrm(ks[2], (K, V, V), 0.3)
    AL = nrm(ks[3], (K, V, V), 0.3)          # learned adjacency of gcn_self

    # gcn (shared for A and K_A) and gcn_self 1x1 convs: Cin -> K*Cout
    Wg = nrm(ks[4], (K * Cout, Cin), 0.3)
    bg = nrm(ks[5], (K * Cout,), 0.1)
    Ws = nrm(ks[6], (K * Cout, Cin), 0.3)
    bs = nrm(ks[7], (K * Cout,), 0.1)

    # tcn: BN1 -> ReLU -> Conv2d(Cout,Cout,(kt,1),pad) -> BN2 -> Dropout(0)
    g1 = 1.0 + nrm(ks[8], (Cout,), 0.1)
    beta1 = nrm(ks[9], (Cout,), 0.1)
    m1 = nrm(ks[10], (Cout,), 0.1)
    v1 = jax.random.uniform(ks[11], (Cout,), jnp.float32, 0.5, 1.5)
    Wt = nrm(ks[12], (Cout, Cout, kt), 0.1)   # torch (Cout, Cin=Cout, kt, 1) squeezed
    bt = nrm(ks[13], (Cout,), 0.1)
    g2 = 1.0 + nrm(ks[14], (Cout,), 0.1)
    beta2 = nrm(ks[15], (Cout,), 0.1)
    m2 = nrm(ks[16], (Cout,), 0.1)
    v2 = jax.random.uniform(ks[17], (Cout,), jnp.float32, 0.5, 1.5)

    # residual: Conv2d(Cin,Cout,1) + BN (Cin != Cout branch)
    Wr = nrm(ks[18], (Cout, Cin), 0.3)
    br = nrm(ks[19], (Cout,), 0.1)
    gr = 1.0 + nrm(ks[20], (Cout,), 0.1)
    betar = nrm(ks[21], (Cout,), 0.1)
    mr = nrm(ks[22], (Cout,), 0.1)
    vr = jax.random.uniform(ks[23], (Cout,), jnp.float32, 0.5, 1.5)

    # Fold eval-mode BatchNorms into per-channel scale/bias.
    s1 = g1 / jnp.sqrt(v1 + eps)
    b1 = beta1 - m1 * s1
    s2 = g2 / jnp.sqrt(v2 + eps)
    b2 = beta2 - m2 * s2
    sr = gr / jnp.sqrt(vr + eps)
    Wrf = Wr * sr[:, None]                    # fold BN into residual conv
    brf = sr * br + (betar - mr * sr)

    # Precompute all grid-constant operands once (per parameter update).
    consts = precompute_st_gcn_constants(A, KA, AL, Wg, bg, Ws, bs, s1, b1,
                                         Wt, bt, s2, b2, Wrf, brf, T)

    out, A_learn = st_gcn_forward(x, consts, AL, batch_block=2)
    out = jax.block_until_ready(out)
    A_learn = jax.block_until_ready(A_learn)

    ref = reference(x, A, KA, AL, Wg, bg, Ws, bs, s1, b1, Wt, bt, s2, b2, Wrf, brf,
                    K, Cout, kt)
    np.testing.assert_allclose(np.asarray(out), np.asarray(ref), rtol=5e-2, atol=5e-2)
    np.testing.assert_allclose(np.asarray(A_learn), np.asarray(AL), rtol=0, atol=0)
    assert out.shape == (N, Cout, T, V)

    print("KERNEL_OK")
</pallas_src>

<mosaic_0001>
module attributes {stable_mosaic.version = 11 : i64} {
  func.func @k(%arg0: memref<8x128xf32, #tpu.memory_space<vmem>>, %arg1: memref<8x128xf32, #tpu.memory_space<vmem>>) attributes {dimension_semantics = [], scalar_prefetch = 0 : i64, scratch_operands = 0 : i64, tpu.core_type = #tpu.core_type<tc>} {
    %c0 = arith.constant 0 : index
    %c0_0 = arith.constant 0 : index
    %0 = vector.load %arg0[%c0, %c0_0] : memref<8x128xf32, #tpu.memory_space<vmem>>, vector<8x128xf32>
    %c3_i32 = arith.constant 3 : i32
    %1 = tpu.dynamic_rotate %0 by %c3_i32 dim 1 : vector<8x128xf32>, i32 -> vector<8x128xf32>
    %c0_1 = arith.constant 0 : index
    %c0_2 = arith.constant 0 : index
    %2 = vector.load %arg1[%c0_1, %c0_2] : memref<8x128xf32, #tpu.memory_space<vmem>>, vector<8x128xf32>
    tpu.vector_store %arg1[%c0_1, %c0_2], %1 {strides = array<i32>} : memref<8x128xf32, #tpu.memory_space<vmem>>, vector<8x128xf32>,
    return
  }
}

module attributes {stable_mosaic.version = 11 : i64} {
  func.func @kernel(%arg0: i32, %arg1: memref<2x8x128xbf16, #tpu.memory_space<vmem>>, %arg2: memref<6x128x128xbf16, #tpu.memory_space<vmem>>, %arg3: memref<32x48xbf16, #tpu.memory_space<vmem>>, %arg4: memref<32x128xf32, #tpu.memory_space<vmem>>, %arg5: memref<3x32x32xbf16, #tpu.memory_space<vmem>>, %arg6: memref<32x8xbf16, #tpu.memory_space<vmem>>, %arg7: memref<32x1xf32, #tpu.memory_space<vmem>>, %arg8: memref<2x32x128xf32, #tpu.memory_space<vmem>>) attributes {dimension_semantics = [#tpu.dimension_semantics<parallel>], iteration_bounds = array<i64: 2>, scalar_prefetch = 0 : i64, scratch_operands = 0 : i64, tpu.core_type = #tpu.core_type<tc>, window_params = [{transform_indices = @transform_0, window_bounds = array<i64: 2, 8, 128>}, {pipeline_mode = #tpu.pipeline_mode<synchronous>, transform_indices = @transform_1, window_bounds = array<i64: 6, 128, 128>}, {pipeline_mode = #tpu.pipeline_mode<synchronous>, transform_indices = @transform_2, window_bounds = array<i64: 32, 48>}, {pipeline_mode = #tpu.pipeline_mode<synchronous>, transform_indices = @transform_3, window_bounds = array<i64: 32, 128>}, {pipeline_mode = #tpu.pipeline_mode<synchronous>, transform_indices = @transform_4, window_bounds = array<i64: 3, 32, 32>}, {pipeline_mode = #tpu.pipeline_mode<synchronous>, transform_indices = @transform_5, window_bounds = array<i64: 32, 8>}, {pipeline_mode = #tpu.pipeline_mode<synchronous>, transform_indices = @transform_6, window_bounds = array<i64: 32, 1>}, {transform_indices = @transform_7, window_bounds = array<i64: 2, 32, 128>}]} {
    %c0 = arith.constant 0 : index
    %c0_0 = arith.constant 0 : index
    %c0_1 = arith.constant 0 : index
    %0 = vector.load %arg1[%c0, %c0_0, %c0_1] : memref<2x8x128xbf16, #tpu.memory_space<vmem>>, vector<2x8x128xbf16>
    %1 = vector.shape_cast %0 : vector<2x8x128xbf16> to vector<16x128xbf16>
    %c0_2 = arith.constant 0 : index
    %c0_3 = arith.constant 0 : index
    %c0_4 = arith.constant 0 : index
    %2 = vector.load %arg2[%c0_2, %c0_3, %c0_4] : memref<6x128x128xbf16, #tpu.memory_space<vmem>>, vector<1x128x128xbf16>
    %3 = vector.shape_cast %2 : vector<1x128x128xbf16> to vector<128x128xbf16>
    %cst = arith.constant dense<0.000000e+00> : vector<16x128xf32>
    %4 = tpu.matmul %1, %3, %cst {dimension_numbers = #tpu.dot_dimension_numbers<[1], [0], [0], [1], [0, 0, 1, 1], [], []>} : vector<16x128xbf16>, vector<128x128xbf16>, vector<16x128xf32> -> vector<16x128xf32>
    %c1 = arith.constant 1 : index
    %c0_5 = arith.constant 0 : index
    %c0_6 = arith.constant 0 : index
    %5 = vector.load %arg2[%c1, %c0_5, %c0_6] : memref<6x128x128xbf16, #tpu.memory_space<vmem>>, vector<1x128x128xbf16>
    %6 = vector.shape_cast %5 : vector<1x128x128xbf16> to vector<128x128xbf16>
    %cst_7 = arith.constant dense<0.000000e+00> : vector<16x128xf32>
    %7 = tpu.matmul %1, %6, %cst_7 {dimension_numbers = #tpu.dot_dimension_numbers<[1], [0], [0], [1], [0, 0, 1, 1], [], []>} : vector<16x128xbf16>, vector<128x128xbf16>, vector<16x128xf32> -> vector<16x128xf32>
    %c2 = arith.constant 2 : index
    %c0_8 = arith.constant 0 : index
    %c0_9 = arith.constant 0 : index
    %8 = vector.load %arg2[%c2, %c0_8, %c0_9] : memref<6x128x128xbf16, #tpu.memory_space<vmem>>, vector<1x128x128xbf16>
    %9 = vector.shape_cast %8 : vector<1x128x128xbf16> to vector<128x128xbf16>
    %cst_10 = arith.constant dense<0.000000e+00> : vector<16x128xf32>
    %10 = tpu.matmul %1, %9, %cst_10 {dimension_numbers = #tpu.dot_dimension_numbers<[1], [0], [0], [1], [0, 0, 1, 1], [], []>} : vector<16x128xbf16>, vector<128x128xbf16>, vector<16x128xf32> -> vector<16x128xf32>
    %c3 = arith.constant 3 : index
    %c0_11 = arith.constant 0 : index
    %c0_12 = arith.constant 0 : index
    %11 = vector.load %arg2[%c3, %c0_11, %c0_12] : memref<6x128x128xbf16, #tpu.memory_space<vmem>>, vector<1x128x128xbf16>
    %12 = vector.shape_cast %11 : vector<1x128x128xbf16> to vector<128x128xbf16>
    %cst_13 = arith.constant dense<0.000000e+00> : vector<16x128xf32>
    %13 = tpu.matmul %1, %12, %cst_13 {dimension_numbers = #tpu.dot_dimension_numbers<[1], [0], [0], [1], [0, 0, 1, 1], [], []>} : vector<16x128xbf16>, vector<128x128xbf16>, vector<16x128xf32> -> vector<16x128xf32>
    %c4 = arith.constant 4 : index
    %c0_14 = arith.constant 0 : index
    %c0_15 = arith.constant 0 : index
    %14 = vector.load %arg2[%c4, %c0_14, %c0_15] : memref<6x128x128xbf16, #tpu.memory_space<vmem>>, vector<1x128x128xbf16>
    %15 = vector.shape_cast %14 : vector<1x128x128xbf16> to vector<128x128xbf16>
    %cst_16 = arith.constant dense<0.000000e+00> : vector<16x128xf32>
    %16 = tpu.matmul %1, %15, %cst_16 {dimension_numbers = #tpu.dot_dimension_numbers<[1], [0], [0], [1], [0, 0, 1, 1], [], []>} : vector<16x128xbf16>, vector<128x128xbf16>, vector<16x128xf32> -> vector<16x128xf32>
    %c5 = arith.constant 5 : index
    %c0_17 = arith.constant 0 : index
    %c0_18 = arith.constant 0 : index
    %17 = vector.load %arg2[%c5, %c0_17, %c0_18] : memref<6x128x128xbf16, #tpu.memory_space<vmem>>, vector<1x128x128xbf16>
    %18 = vector.shape_cast %17 : vector<1x128x128xbf16> to vector<128x128xbf16>
    %cst_19 = arith.constant dense<0.000000e+00> : vector<16x128xf32>
    %19 = tpu.matmul %1, %18, %cst_19 {dimension_numbers = #tpu.dot_dimension_numbers<[1], [0], [0], [1], [0, 0, 1, 1], [], []>} : vector<16x128xbf16>, vector<128x128xbf16>, vector<16x128xf32> -> vector<16x128xf32>
    %c0_20 = arith.constant 0 : index
    %c0_21 = arith.constant 0 : index
    %20 = vector.load %arg3[%c0_20, %c0_21] : memref<32x48xbf16, #tpu.memory_space<vmem>>, vector<32x48xbf16>
    %c0_22 = arith.constant 0 : index
    %c0_23 = arith.constant 0 : index
    %21 = vector.load %arg4[%c0_22, %c0_23] : memref<32x128xf32, #tpu.memory_space<vmem>>, vector<32x128xf32>
    %c0_24 = arith.constant 0 : index
    %c0_25 = arith.constant 0 : index
    %c0_26 = arith.constant 0 : index
    %22 = vector.load %arg5[%c0_24, %c0_25, %c0_26] : memref<3x32x32xbf16, #tpu.memory_space<vmem>>, vector<3x32x32xbf16>
    %c0_27 = arith.constant 0 : index
    %c0_28 = arith.constant 0 : index
    %23 = vector.load %arg6[%c0_27, %c0_28] : memref<32x8xbf16, #tpu.memory_space<vmem>>, vector<32x8xbf16>
    %c0_29 = arith.constant 0 : index
    %c0_30 = arith.constant 0 : index
    %24 = vector.load %arg7[%c0_29, %c0_30] : memref<32x1xf32, #tpu.memory_space<vmem>>, vector<32x1xf32>
    %25 = tpu.iota {dimensions = array<i32: 1>} : vector<32x128xi32>
    %c16_i32 = arith.constant 16 : i32
    %26 = vector.broadcast %c16_i32 : i32 to vector<32x128xi32>
    %27 = arith.cmpi sge, %25, %26 : vector<32x128xi32>
    %c128_i32 = arith.constant 128 : i32
    %28 = vector.broadcast %c128_i32 : i32 to vector<32x128xi32>
    %29 = arith.cmpi slt, %25, %28 : vector<32x128xi32>
    %30 = arith.andi %27, %29 : vector<32x128xi1>
    %c0_i32 = arith.constant 0 : i32
    %31 = vector.broadcast %c0_i32 : i32 to vector<32x128xi32>
    %32 = arith.cmpi sge, %25, %31 : vector<32x128xi32>
    %c112_i32 = arith.constant 112 : i32
    %33 = vector.broadcast %c112_i32 : i32 to vector<32x128xi32>
    %34 = arith.cmpi slt, %25, %33 : vector<32x128xi32>
    %35 = arith.andi %32, %34 : vector<32x128xi1>
    %36 = vector.extract_strided_slice %4 {offsets = [0, 0], sizes = [8, 128], strides = [1, 1]} : vector<16x128xf32> to vector<8x128xf32>
    %37 = vector.extract_strided_slice %7 {offsets = [0, 0], sizes = [8, 128], strides = [1, 1]} : vector<16x128xf32> to vector<8x128xf32>
    %38 = vector.extract_strided_slice %10 {offsets = [0, 0], sizes = [8, 128], strides = [1, 1]} : vector<16x128xf32> to vector<8x128xf32>
    %39 = vector.extract_strided_slice %13 {offsets = [0, 0], sizes = [8, 128], strides = [1, 1]} : vector<16x128xf32> to vector<8x128xf32>
    %40 = vector.extract_strided_slice %16 {offsets = [0, 0], sizes = [8, 128], strides = [1, 1]} : vector<16x128xf32> to vector<8x128xf32>
    %41 = vector.extract_strided_slice %19 {offsets = [0, 0], sizes = [8, 128], strides = [1, 1]} : vector<16x128xf32> to vector<8x128xf32>
    %42 = tpu.concatenate %36, %37, %38, %39, %40, %41 in 0 : vector<8x128xf32>, vector<8x128xf32>, vector<8x128xf32>, vector<8x128xf32>, vector<8x128xf32>, vector<8x128xf32> -> vector<48x128xf32>
    %43 = arith.truncf %42 : vector<48x128xf32> to vector<48x128xbf16>
    %cst_31 = arith.constant dense<0.000000e+00> : vector<32x128xf32>
    %44 = tpu.matmul %20, %43, %cst_31 {dimension_numbers = #tpu.dot_dimension_numbers<[1], [0], [0], [1], [0, 0, 1, 1], [], []>} : vector<32x48xbf16>, vector<48x128xbf16>, vector<32x128xf32> -> vector<32x128xf32>
    %45 = arith.addf %44, %21 : vector<32x128xf32>
    %cst_32 = arith.constant 0.000000e+00 : f32
    %46 = vector.broadcast %cst_32 : f32 to vector<32x128xf32>
    %47 = arith.maximumf %45, %46 : vector<32x128xf32>
    %cst_33 = arith.constant 0.000000e+00 : f32
    %48 = vector.broadcast %cst_33 : f32 to vector<32x128xf32>
    %c16_i32_34 = arith.constant 16 : i32
    %49 = tpu.dynamic_rotate %47 by %c16_i32_34 dim 1 : vector<32x128xf32>, i32 -> vector<32x128xf32>
    %cst_35 = arith.constant 0.000000e+00 : f32
    %50 = vector.broadcast %cst_35 : f32 to vector<32x128xf32>
    %51 = arith.select %30, %49, %50 : vector<32x128xi1>, vector<32x128xf32>
    %52 = vector.extract_strided_slice %22 {offsets = [0, 0, 0], sizes = [1, 32, 32], strides = [1, 1, 1]} : vector<3x32x32xbf16> to vector<1x32x32xbf16>
    %53 = vector.shape_cast %52 : vector<1x32x32xbf16> to vector<32x32xbf16>
    %54 = arith.truncf %51 : vector<32x128xf32> to vector<32x128xbf16>
    %cst_36 = arith.constant dense<0.000000e+00> : vector<32x128xf32>
    %55 = tpu.matmul %53, %54, %cst_36 {dimension_numbers = #tpu.dot_dimension_numbers<[1], [0], [0], [1], [0, 0, 1, 1], [], []>} : vector<32x32xbf16>, vector<32x128xbf16>, vector<32x128xf32> -> vector<32x128xf32>
    %56 = arith.addf %48, %55 : vector<32x128xf32>
    %57 = vector.extract_strided_slice %22 {offsets = [1, 0, 0], sizes = [1, 32, 32], strides = [1, 1, 1]} : vector<3x32x32xbf16> to vector<1x32x32xbf16>
    %58 = vector.shape_cast %57 : vector<1x32x32xbf16> to vector<32x32xbf16>
    %59 = arith.truncf %47 : vector<32x128xf32> to vector<32x128xbf16>
    %cst_37 = arith.constant dense<0.000000e+00> : vector<32x128xf32>
    %60 = tpu.matmul %58, %59, %cst_37 {dimension_numbers = #tpu.dot_dimension_numbers<[1], [0], [0], [1], [0, 0, 1, 1], [], []>} : vector<32x32xbf16>, vector<32x128xbf16>, vector<32x128xf32> -> vector<32x128xf32>
    %61 = arith.addf %56, %60 : vector<32x128xf32>
    %c112_i32_38 = arith.constant 112 : i32
    %62 = tpu.dynamic_rotate %47 by %c112_i32_38 dim 1 : vector<32x128xf32>, i32 -> vector<32x128xf32>
    %cst_39 = arith.constant 0.000000e+00 : f32
    %63 = vector.broadcast %cst_39 : f32 to vector<32x128xf32>
    %64 = arith.select %35, %62, %63 : vector<32x128xi1>, vector<32x128xf32>
    %65 = vector.extract_strided_slice %22 {offsets = [2, 0, 0], sizes = [1, 32, 32], strides = [1, 1, 1]} : vector<3x32x32xbf16> to vector<1x32x32xbf16>
    %66 = vector.shape_cast %65 : vector<1x32x32xbf16> to vector<32x32xbf16>
    %67 = arith.truncf %64 : vector<32x128xf32> to vector<32x128xbf16>
    %cst_40 = arith.constant dense<0.000000e+00> : vector<32x128xf32>
    %68 = tpu.matmul %66, %67, %cst_40 {dimension_numbers = #tpu.dot_dimension_numbers<[1], [0], [0], [1], [0, 0, 1, 1], [], []>} : vector<32x32xbf16>, vector<32x128xbf16>, vector<32x128xf32> -> vector<32x128xf32>
    %69 = arith.addf %61, %68 : vector<32x128xf32>
    %70 = vector.extract_strided_slice %0 {offsets = [0, 0, 0], sizes = [1, 8, 128], strides = [1, 1, 1]} : vector<2x8x128xbf16> to vector<1x8x128xbf16>
    %71 = vector.shape_cast %70 : vector<1x8x128xbf16> to vector<8x128xbf16>
    %cst_41 = arith.constant dense<0.000000e+00> : vector<32x128xf32>
    %72 = tpu.matmul %23, %71, %cst_41 {dimension_numbers = #tpu.dot_dimension_numbers<[1], [0], [0], [1], [0, 0, 1, 1], [], []>} : vector<32x8xbf16>, vector<8x128xbf16>, vector<32x128xf32> -> vector<32x128xf32>
    %73 = arith.addf %69, %72 : vector<32x128xf32>
    %74 = vector.broadcast %24 : vector<32x1xf32> to vector<32x128xf32>
    %75 = arith.addf %73, %74 : vector<32x128xf32>
    %cst_42 = arith.constant 0.000000e+00 : f32
    %76 = vector.broadcast %cst_42 : f32 to vector<32x128xf32>
    %77 = arith.maximumf %75, %76 : vector<32x128xf32>
    %c0_43 = arith.constant 0 : index
    %c0_44 = arith.constant 0 : index
    %c0_45 = arith.constant 0 : index
    %78 = vector.load %arg8[%c0_43, %c0_44, %c0_45] : memref<2x32x128xf32, #tpu.memory_space<vmem>>, vector<1x32x128xf32>
    %79 = vector.shape_cast %78 : vector<1x32x128xf32> to vector<32x128xf32>
    %80 = vector.shape_cast %77 : vector<32x128xf32> to vector<1x32x128xf32>
    tpu.vector_store %arg8[%c0_43, %c0_44, %c0_45], %80 {strides = array<i32>} : memref<2x32x128xf32, #tpu.memory_space<vmem>>, vector<1x32x128xf32>,
    %81 = vector.extract_strided_slice %4 {offsets = [8, 0], sizes = [8, 128], strides = [1, 1]} : vector<16x128xf32> to vector<8x128xf32>
    %82 = vector.extract_strided_slice %7 {offsets = [8, 0], sizes = [8, 128], strides = [1, 1]} : vector<16x128xf32> to vector<8x128xf32>
    %83 = vector.extract_strided_slice %10 {offsets = [8, 0], sizes = [8, 128], strides = [1, 1]} : vector<16x128xf32> to vector<8x128xf32>
    %84 = vector.extract_strided_slice %13 {offsets = [8, 0], sizes = [8, 128], strides = [1, 1]} : vector<16x128xf32> to vector<8x128xf32>
    %85 = vector.extract_strided_slice %16 {offsets = [8, 0], sizes = [8, 128], strides = [1, 1]} : vector<16x128xf32> to vector<8x128xf32>
    %86 = vector.extract_strided_slice %19 {offsets = [8, 0], sizes = [8, 128], strides = [1, 1]} : vector<16x128xf32> to vector<8x128xf32>
    %87 = tpu.concatenate %81, %82, %83, %84, %85, %86 in 0 : vector<8x128xf32>, vector<8x128xf32>, vector<8x128xf32>, vector<8x128xf32>, vector<8x128xf32>, vector<8x128xf32> -> vector<48x128xf32>
    %88 = arith.truncf %87 : vector<48x128xf32> to vector<48x128xbf16>
    %cst_46 = arith.constant dense<0.000000e+00> : vector<32x128xf32>
    %89 = tpu.matmul %20, %88, %cst_46 {dimension_numbers = #tpu.dot_dimension_numbers<[1], [0], [0], [1], [0, 0, 1, 1], [], []>} : vector<32x48xbf16>, vector<48x128xbf16>, vector<32x128xf32> -> vector<32x128xf32>
    %90 = arith.addf %89, %21 : vector<32x128xf32>
    %cst_47 = arith.constant 0.000000e+00 : f32
    %91 = vector.broadcast %cst_47 : f32 to vector<32x128xf32>
    %92 = arith.maximumf %90, %91 : vector<32x128xf32>
    %cst_48 = arith.constant 0.000000e+00 : f32
    %93 = vector.broadcast %cst_48 : f32 to vector<32x128xf32>
    %c16_i32_49 = arith.constant 16 : i32
    %94 = tpu.dynamic_rotate %92 by %c16_i32_49 dim 1 : vector<32x128xf32>, i32 -> vector<32x128xf32>
    %cst_50 = arith.constant 0.000000e+00 : f32
    %95 = vector.broadcast %cst_50 : f32 to vector<32x128xf32>
    %96 = arith.select %30, %94, %95 : vector<32x128xi1>, vector<32x128xf32>
    %97 = vector.extract_strided_slice %22 {offsets = [0, 0, 0], sizes = [1, 32, 32], strides = [1, 1, 1]} : vector<3x32x32xbf16> to vector<1x32x32xbf16>
    %98 = vector.shape_cast %97 : vector<1x32x32xbf16> to vector<32x32xbf16>
    %99 = arith.truncf %96 : vector<32x128xf32> to vector<32x128xbf16>
    %cst_51 = arith.constant dense<0.000000e+00> : vector<32x128xf32>
    %100 = tpu.matmul %98, %99, %cst_51 {dimension_numbers = #tpu.dot_dimension_numbers<[1], [0], [0], [1], [0, 0, 1, 1], [], []>} : vector<32x32xbf16>, vector<32x128xbf16>, vector<32x128xf32> -> vector<32x128xf32>
    %101 = arith.addf %93, %100 : vector<32x128xf32>
    %102 = vector.extract_strided_slice %22 {offsets = [1, 0, 0], sizes = [1, 32, 32], strides = [1, 1, 1]} : vector<3x32x32xbf16> to vector<1x32x32xbf16>
    %103 = vector.shape_cast %102 : vector<1x32x32xbf16> to vector<32x32xbf16>
    %104 = arith.truncf %92 : vector<32x128xf32> to vector<32x128xbf16>
    %cst_52 = arith.constant dense<0.000000e+00> : vector<32x128xf32>
    %105 = tpu.matmul %103, %104, %cst_52 {dimension_numbers = #tpu.dot_dimension_numbers<[1], [0], [0], [1], [0, 0, 1, 1], [], []>} : vector<32x32xbf16>, vector<32x128xbf16>, vector<32x128xf32> -> vector<32x128xf32>
    %106 = arith.addf %101, %105 : vector<32x128xf32>
    %c112_i32_53 = arith.constant 112 : i32
    %107 = tpu.dynamic_rotate %92 by %c112_i32_53 dim 1 : vector<32x128xf32>, i32 -> vector<32x128xf32>
    %cst_54 = arith.constant 0.000000e+00 : f32
    %108 = vector.broadcast %cst_54 : f32 to vector<32x128xf32>
    %109 = arith.select %35, %107, %108 : vector<32x128xi1>, vector<32x128xf32>
    %110 = vector.extract_strided_slice %22 {offsets = [2, 0, 0], sizes = [1, 32, 32], strides = [1, 1, 1]} : vector<3x32x32xbf16> to vector<1x32x32xbf16>
    %111 = vector.shape_cast %110 : vector<1x32x32xbf16> to vector<32x32xbf16>
    %112 = arith.truncf %109 : vector<32x128xf32> to vector<32x128xbf16>
    %cst_55 = arith.constant dense<0.000000e+00> : vector<32x128xf32>
    %113 = tpu.matmul %111, %112, %cst_55 {dimension_numbers = #tpu.dot_dimension_numbers<[1], [0], [0], [1], [0, 0, 1, 1], [], []>} : vector<32x32xbf16>, vector<32x128xbf16>, vector<32x128xf32> -> vector<32x128xf32>
    %114 = arith.addf %106, %113 : vector<32x128xf32>
    %115 = vector.extract_strided_slice %0 {offsets = [1, 0, 0], sizes = [1, 8, 128], strides = [1, 1, 1]} : vector<2x8x128xbf16> to vector<1x8x128xbf16>
    %116 = vector.shape_cast %115 : vector<1x8x128xbf16> to vector<8x128xbf16>
    %cst_56 = arith.constant dense<0.000000e+00> : vector<32x128xf32>
    %117 = tpu.matmul %23, %116, %cst_56 {dimension_numbers = #tpu.dot_dimension_numbers<[1], [0], [0], [1], [0, 0, 1, 1], [], []>} : vector<32x8xbf16>, vector<8x128xbf16>, vector<32x128xf32> -> vector<32x128xf32>
    %118 = arith.addf %114, %117 : vector<32x128xf32>
    %119 = vector.broadcast %24 : vector<32x1xf32> to vector<32x128xf32>
    %120 = arith.addf %118, %119 : vector<32x128xf32>
    %cst_57 = arith.constant 0.000000e+00 : f32
    %121 = vector.broadcast %cst_57 : f32 to vector<32x128xf32>
    %122 = arith.maximumf %120, %121 : vector<32x128xf32>
    %c1_58 = arith.constant 1 : index
    %c0_59 = arith.constant 0 : index
    %c0_60 = arith.constant 0 : index
    %123 = vector.load %arg8[%c1_58, %c0_59, %c0_60] : memref<2x32x128xf32, #tpu.memory_space<vmem>>, vector<1x32x128xf32>
    %124 = vector.shape_cast %123 : vector<1x32x128xf32> to vector<32x128xf32>
    %125 = vector.shape_cast %122 : vector<32x128xf32> to vector<1x32x128xf32>
    tpu.vector_store %arg8[%c1_58, %c0_59, %c0_60], %125 {strides = array<i32>} : memref<2x32x128xf32, #tpu.memory_space<vmem>>, vector<1x32x128xf32>,
    return
  }
  func.func @transform_0(%arg0: i32) -> (i32, i32, i32) {
    %c0_i32 = arith.constant 0 : i32
    %c0_i32_0 = arith.constant 0 : i32
    %c0_i32_1 = arith.constant 0 : i32
    return %arg0, %c0_i32, %c0_i32_0 : i32, i32, i32
  }
  func.func @transform_1(%arg0: i32) -> (i32, i32, i32) {
    %c0_i32 = arith.constant 0 : i32
    %c0_i32_0 = arith.constant 0 : i32
    %c0_i32_1 = arith.constant 0 : i32
    %c0_i32_2 = arith.constant 0 : i32
    return %c0_i32, %c0_i32_0, %c0_i32_1 : i32, i32, i32
  }
  func.func @transform_2(%arg0: i32) -> (i32, i32) {
    %c0_i32 = arith.constant 0 : i32
    %c0_i32_0 = arith.constant 0 : i32
    %c0_i32_1 = arith.constant 0 : i32
    return %c0_i32, %c0_i32_0 : i32, i32
  }
  func.func @transform_3(%arg0: i32) -> (i32, i32) {
    %c0_i32 = arith.constant 0 : i32
    %c0_i32_0 = arith.constant 0 : i32
    %c0_i32_1 = arith.constant 0 : i32
    return %c0_i32, %c0_i32_0 : i32, i32
  }
  func.func @transform_4(%arg0: i32) -> (i32, i32, i32) {
    %c0_i32 = arith.constant 0 : i32
    %c0_i32_0 = arith.constant 0 : i32
    %c0_i32_1 = arith.constant 0 : i32
    %c0_i32_2 = arith.constant 0 : i32
    return %c0_i32, %c0_i32_0, %c0_i32_1 : i32, i32, i32
  }
  func.func @transform_5(%arg0: i32) -> (i32, i32) {
    %c0_i32 = arith.constant 0 : i32
    %c0_i32_0 = arith.constant 0 : i32
    %c0_i32_1 = arith.constant 0 : i32
    return %c0_i32, %c0_i32_0 : i32, i32
  }
  func.func @transform_6(%arg0: i32) -> (i32, i32) {
    %c0_i32 = arith.constant 0 : i32
    %c0_i32_0 = arith.constant 0 : i32
    %c0_i32_1 = arith.constant 0 : i32
    return %c0_i32, %c0_i32_0 : i32, i32
  }
  func.func @transform_7(%arg0: i32) -> (i32, i32, i32) {
    %c0_i32 = arith.constant 0 : i32
    %c0_i32_0 = arith.constant 0 : i32
    %c0_i32_1 = arith.constant 0 : i32
    return %arg0, %c0_i32, %c0_i32_0 : i32, i32, i32
  }
}

module attributes {stable_mosaic.version = 11 : i64} {
  func.func @kernel(%arg0: i32, %arg1: memref<2x8x128xbf16, #tpu.memory_space<vmem>>, %arg2: memref<6x128x128xbf16, #tpu.memory_space<vmem>>, %arg3: memref<32x48xbf16, #tpu.memory_space<vmem>>, %arg4: memref<32x128xf32, #tpu.memory_space<vmem>>, %arg5: memref<3x32x32xbf16, #tpu.memory_space<vmem>>, %arg6: memref<32x8xbf16, #tpu.memory_space<vmem>>, %arg7: memref<32x1xf32, #tpu.memory_space<vmem>>, %arg8: memref<2x32x128xf32, #tpu.memory_space<vmem>>) attributes {dimension_semantics = [#tpu.dimension_semantics<parallel>], iteration_bounds = array<i64: 2>, scalar_prefetch = 0 : i64, scratch_operands = 0 : i64, tpu.core_type = #tpu.core_type<tc>, window_params = [{transform_indices = @transform_0, window_bounds = array<i64: 2, 8, 128>}, {pipeline_mode = #tpu.pipeline_mode<synchronous>, transform_indices = @transform_1, window_bounds = array<i64: 6, 128, 128>}, {pipeline_mode = #tpu.pipeline_mode<synchronous>, transform_indices = @transform_2, window_bounds = array<i64: 32, 48>}, {pipeline_mode = #tpu.pipeline_mode<synchronous>, transform_indices = @transform_3, window_bounds = array<i64: 32, 128>}, {pipeline_mode = #tpu.pipeline_mode<synchronous>, transform_indices = @transform_4, window_bounds = array<i64: 3, 32, 32>}, {pipeline_mode = #tpu.pipeline_mode<synchronous>, transform_indices = @transform_5, window_bounds = array<i64: 32, 8>}, {pipeline_mode = #tpu.pipeline_mode<synchronous>, transform_indices = @transform_6, window_bounds = array<i64: 32, 1>}, {transform_indices = @transform_7, window_bounds = array<i64: 2, 32, 128>}]} {
    %c0 = arith.constant 0 : index
    %c0_0 = arith.constant 0 : index
    %c0_1 = arith.constant 0 : index
    %0 = vector.load %arg1[%c0, %c0_0, %c0_1] : memref<2x8x128xbf16, #tpu.memory_space<vmem>>, vector<2x8x128xbf16>
    %1 = vector.shape_cast %0 : vector<2x8x128xbf16> to vector<16x128xbf16>
    %c0_2 = arith.constant 0 : index
    %c0_3 = arith.constant 0 : index
    %c0_4 = arith.constant 0 : index
    %2 = vector.load %arg2[%c0_2, %c0_3, %c0_4] : memref<6x128x128xbf16, #tpu.memory_space<vmem>>, vector<1x128x128xbf16>
    %3 = vector.shape_cast %2 : vector<1x128x128xbf16> to vector<128x128xbf16>
    %cst = arith.constant dense<0.000000e+00> : vector<16x128xf32>
    %4 = tpu.matmul %1, %3, %cst {dimension_numbers = #tpu.dot_dimension_numbers<[1], [0], [0], [1], [0, 0, 1, 1], [], []>} : vector<16x128xbf16>, vector<128x128xbf16>, vector<16x128xf32> -> vector<16x128xf32>
    %c1 = arith.constant 1 : index
    %c0_5 = arith.constant 0 : index
    %c0_6 = arith.constant 0 : index
    %5 = vector.load %arg2[%c1, %c0_5, %c0_6] : memref<6x128x128xbf16, #tpu.memory_space<vmem>>, vector<1x128x128xbf16>
    %6 = vector.shape_cast %5 : vector<1x128x128xbf16> to vector<128x128xbf16>
    %cst_7 = arith.constant dense<0.000000e+00> : vector<16x128xf32>
    %7 = tpu.matmul %1, %6, %cst_7 {dimension_numbers = #tpu.dot_dimension_numbers<[1], [0], [0], [1], [0, 0, 1, 1], [], []>} : vector<16x128xbf16>, vector<128x128xbf16>, vector<16x128xf32> -> vector<16x128xf32>
    %c2 = arith.constant 2 : index
    %c0_8 = arith.constant 0 : index
    %c0_9 = arith.constant 0 : index
    %8 = vector.load %arg2[%c2, %c0_8, %c0_9] : memref<6x128x128xbf16, #tpu.memory_space<vmem>>, vector<1x128x128xbf16>
    %9 = vector.shape_cast %8 : vector<1x128x128xbf16> to vector<128x128xbf16>
    %cst_10 = arith.constant dense<0.000000e+00> : vector<16x128xf32>
    %10 = tpu.matmul %1, %9, %cst_10 {dimension_numbers = #tpu.dot_dimension_numbers<[1], [0], [0], [1], [0, 0, 1, 1], [], []>} : vector<16x128xbf16>, vector<128x128xbf16>, vector<16x128xf32> -> vector<16x128xf32>
    %c3 = arith.constant 3 : index
    %c0_11 = arith.constant 0 : index
    %c0_12 = arith.constant 0 : index
    %11 = vector.load %arg2[%c3, %c0_11, %c0_12] : memref<6x128x128xbf16, #tpu.memory_space<vmem>>, vector<1x128x128xbf16>
    %12 = vector.shape_cast %11 : vector<1x128x128xbf16> to vector<128x128xbf16>
    %cst_13 = arith.constant dense<0.000000e+00> : vector<16x128xf32>
    %13 = tpu.matmul %1, %12, %cst_13 {dimension_numbers = #tpu.dot_dimension_numbers<[1], [0], [0], [1], [0, 0, 1, 1], [], []>} : vector<16x128xbf16>, vector<128x128xbf16>, vector<16x128xf32> -> vector<16x128xf32>
    %c4 = arith.constant 4 : index
    %c0_14 = arith.constant 0 : index
    %c0_15 = arith.constant 0 : index
    %14 = vector.load %arg2[%c4, %c0_14, %c0_15] : memref<6x128x128xbf16, #tpu.memory_space<vmem>>, vector<1x128x128xbf16>
    %15 = vector.shape_cast %14 : vector<1x128x128xbf16> to vector<128x128xbf16>
    %cst_16 = arith.constant dense<0.000000e+00> : vector<16x128xf32>
    %16 = tpu.matmul %1, %15, %cst_16 {dimension_numbers = #tpu.dot_dimension_numbers<[1], [0], [0], [1], [0, 0, 1, 1], [], []>} : vector<16x128xbf16>, vector<128x128xbf16>, vector<16x128xf32> -> vector<16x128xf32>
    %c5 = arith.constant 5 : index
    %c0_17 = arith.constant 0 : index
    %c0_18 = arith.constant 0 : index
    %17 = vector.load %arg2[%c5, %c0_17, %c0_18] : memref<6x128x128xbf16, #tpu.memory_space<vmem>>, vector<1x128x128xbf16>
    %18 = vector.shape_cast %17 : vector<1x128x128xbf16> to vector<128x128xbf16>
    %cst_19 = arith.constant dense<0.000000e+00> : vector<16x128xf32>
    %19 = tpu.matmul %1, %18, %cst_19 {dimension_numbers = #tpu.dot_dimension_numbers<[1], [0], [0], [1], [0, 0, 1, 1], [], []>} : vector<16x128xbf16>, vector<128x128xbf16>, vector<16x128xf32> -> vector<16x128xf32>
    %c0_20 = arith.constant 0 : index
    %c0_21 = arith.constant 0 : index
    %20 = vector.load %arg3[%c0_20, %c0_21] : memref<32x48xbf16, #tpu.memory_space<vmem>>, vector<32x48xbf16>
    %c0_22 = arith.constant 0 : index
    %c0_23 = arith.constant 0 : index
    %21 = vector.load %arg4[%c0_22, %c0_23] : memref<32x128xf32, #tpu.memory_space<vmem>>, vector<32x128xf32>
    %c0_24 = arith.constant 0 : index
    %c0_25 = arith.constant 0 : index
    %c0_26 = arith.constant 0 : index
    %22 = vector.load %arg5[%c0_24, %c0_25, %c0_26] : memref<3x32x32xbf16, #tpu.memory_space<vmem>>, vector<3x32x32xbf16>
    %c0_27 = arith.constant 0 : index
    %c0_28 = arith.constant 0 : index
    %23 = vector.load %arg6[%c0_27, %c0_28] : memref<32x8xbf16, #tpu.memory_space<vmem>>, vector<32x8xbf16>
    %c0_29 = arith.constant 0 : index
    %c0_30 = arith.constant 0 : index
    %24 = vector.load %arg7[%c0_29, %c0_30] : memref<32x1xf32, #tpu.memory_space<vmem>>, vector<32x1xf32>
    %25 = tpu.iota {dimensions = array<i32: 1>} : vector<32x128xi32>
    %c16_i32 = arith.constant 16 : i32
    %26 = vector.broadcast %c16_i32 : i32 to vector<32x128xi32>
    %27 = arith.cmpi sge, %25, %26 : vector<32x128xi32>
    %c128_i32 = arith.constant 128 : i32
    %28 = vector.broadcast %c128_i32 : i32 to vector<32x128xi32>
    %29 = arith.cmpi slt, %25, %28 : vector<32x128xi32>
    %30 = arith.andi %27, %29 : vector<32x128xi1>
    %c0_i32 = arith.constant 0 : i32
    %31 = vector.broadcast %c0_i32 : i32 to vector<32x128xi32>
    %32 = arith.cmpi sge, %25, %31 : vector<32x128xi32>
    %c112_i32 = arith.constant 112 : i32
    %33 = vector.broadcast %c112_i32 : i32 to vector<32x128xi32>
    %34 = arith.cmpi slt, %25, %33 : vector<32x128xi32>
    %35 = arith.andi %32, %34 : vector<32x128xi1>
    %36 = vector.extract_strided_slice %4 {offsets = [0, 0], sizes = [8, 128], strides = [1, 1]} : vector<16x128xf32> to vector<8x128xf32>
    %37 = vector.extract_strided_slice %7 {offsets = [0, 0], sizes = [8, 128], strides = [1, 1]} : vector<16x128xf32> to vector<8x128xf32>
    %38 = vector.extract_strided_slice %10 {offsets = [0, 0], sizes = [8, 128], strides = [1, 1]} : vector<16x128xf32> to vector<8x128xf32>
    %39 = vector.extract_strided_slice %13 {offsets = [0, 0], sizes = [8, 128], strides = [1, 1]} : vector<16x128xf32> to vector<8x128xf32>
    %40 = vector.extract_strided_slice %16 {offsets = [0, 0], sizes = [8, 128], strides = [1, 1]} : vector<16x128xf32> to vector<8x128xf32>
    %41 = vector.extract_strided_slice %19 {offsets = [0, 0], sizes = [8, 128], strides = [1, 1]} : vector<16x128xf32> to vector<8x128xf32>
    %42 = tpu.concatenate %36, %37, %38, %39, %40, %41 in 0 : vector<8x128xf32>, vector<8x128xf32>, vector<8x128xf32>, vector<8x128xf32>, vector<8x128xf32>, vector<8x128xf32> -> vector<48x128xf32>
    %43 = arith.truncf %42 : vector<48x128xf32> to vector<48x128xbf16>
    %cst_31 = arith.constant dense<0.000000e+00> : vector<32x128xf32>
    %44 = tpu.matmul %20, %43, %cst_31 {dimension_numbers = #tpu.dot_dimension_numbers<[1], [0], [0], [1], [0, 0, 1, 1], [], []>} : vector<32x48xbf16>, vector<48x128xbf16>, vector<32x128xf32> -> vector<32x128xf32>
    %45 = arith.addf %44, %21 : vector<32x128xf32>
    %cst_32 = arith.constant 0.000000e+00 : f32
    %46 = vector.broadcast %cst_32 : f32 to vector<32x128xf32>
    %47 = arith.maximumf %45, %46 : vector<32x128xf32>
    %cst_33 = arith.constant 0.000000e+00 : f32
    %48 = vector.broadcast %cst_33 : f32 to vector<32x128xf32>
    %c16_i32_34 = arith.constant 16 : i32
    %49 = tpu.dynamic_rotate %47 by %c16_i32_34 dim 1 : vector<32x128xf32>, i32 -> vector<32x128xf32>
    %cst_35 = arith.constant 0.000000e+00 : f32
    %50 = vector.broadcast %cst_35 : f32 to vector<32x128xf32>
    %51 = arith.select %30, %49, %50 : vector<32x128xi1>, vector<32x128xf32>
    %52 = vector.extract_strided_slice %22 {offsets = [0, 0, 0], sizes = [1, 32, 32], strides = [1, 1, 1]} : vector<3x32x32xbf16> to vector<1x32x32xbf16>
    %53 = vector.shape_cast %52 : vector<1x32x32xbf16> to vector<32x32xbf16>
    %54 = arith.truncf %51 : vector<32x128xf32> to vector<32x128xbf16>
    %cst_36 = arith.constant dense<0.000000e+00> : vector<32x128xf32>
    %55 = tpu.matmul %53, %54, %cst_36 {dimension_numbers = #tpu.dot_dimension_numbers<[1], [0], [0], [1], [0, 0, 1, 1], [], []>} : vector<32x32xbf16>, vector<32x128xbf16>, vector<32x128xf32> -> vector<32x128xf32>
    %56 = arith.addf %48, %55 : vector<32x128xf32>
    %57 = vector.extract_strided_slice %22 {offsets = [1, 0, 0], sizes = [1, 32, 32], strides = [1, 1, 1]} : vector<3x32x32xbf16> to vector<1x32x32xbf16>
    %58 = vector.shape_cast %57 : vector<1x32x32xbf16> to vector<32x32xbf16>
    %59 = arith.truncf %47 : vector<32x128xf32> to vector<32x128xbf16>
    %cst_37 = arith.constant dense<0.000000e+00> : vector<32x128xf32>
    %60 = tpu.matmul %58, %59, %cst_37 {dimension_numbers = #tpu.dot_dimension_numbers<[1], [0], [0], [1], [0, 0, 1, 1], [], []>} : vector<32x32xbf16>, vector<32x128xbf16>, vector<32x128xf32> -> vector<32x128xf32>
    %61 = arith.addf %56, %60 : vector<32x128xf32>
    %c112_i32_38 = arith.constant 112 : i32
    %62 = tpu.dynamic_rotate %47 by %c112_i32_38 dim 1 : vector<32x128xf32>, i32 -> vector<32x128xf32>
    %cst_39 = arith.constant 0.000000e+00 : f32
    %63 = vector.broadcast %cst_39 : f32 to vector<32x128xf32>
    %64 = arith.select %35, %62, %63 : vector<32x128xi1>, vector<32x128xf32>
    %65 = vector.extract_strided_slice %22 {offsets = [2, 0, 0], sizes = [1, 32, 32], strides = [1, 1, 1]} : vector<3x32x32xbf16> to vector<1x32x32xbf16>
    %66 = vector.shape_cast %65 : vector<1x32x32xbf16> to vector<32x32xbf16>
    %67 = arith.truncf %64 : vector<32x128xf32> to vector<32x128xbf16>
    %cst_40 = arith.constant dense<0.000000e+00> : vector<32x128xf32>
    %68 = tpu.matmul %66, %67, %cst_40 {dimension_numbers = #tpu.dot_dimension_numbers<[1], [0], [0], [1], [0, 0, 1, 1], [], []>} : vector<32x32xbf16>, vector<32x128xbf16>, vector<32x128xf32> -> vector<32x128xf32>
    %69 = arith.addf %61, %68 : vector<32x128xf32>
    %70 = vector.extract_strided_slice %0 {offsets = [0, 0, 0], sizes = [1, 8, 128], strides = [1, 1, 1]} : vector<2x8x128xbf16> to vector<1x8x128xbf16>
    %71 = vector.shape_cast %70 : vector<1x8x128xbf16> to vector<8x128xbf16>
    %cst_41 = arith.constant dense<0.000000e+00> : vector<32x128xf32>
    %72 = tpu.matmul %23, %71, %cst_41 {dimension_numbers = #tpu.dot_dimension_numbers<[1], [0], [0], [1], [0, 0, 1, 1], [], []>} : vector<32x8xbf16>, vector<8x128xbf16>, vector<32x128xf32> -> vector<32x128xf32>
    %73 = arith.addf %69, %72 : vector<32x128xf32>
    %74 = vector.broadcast %24 : vector<32x1xf32> to vector<32x128xf32>
    %75 = arith.addf %73, %74 : vector<32x128xf32>
    %cst_42 = arith.constant 0.000000e+00 : f32
    %76 = vector.broadcast %cst_42 : f32 to vector<32x128xf32>
    %77 = arith.maximumf %75, %76 : vector<32x128xf32>
    %c0_43 = arith.constant 0 : index
    %c0_44 = arith.constant 0 : index
    %c0_45 = arith.constant 0 : index
    %78 = vector.load %arg8[%c0_43, %c0_44, %c0_45] : memref<2x32x128xf32, #tpu.memory_space<vmem>>, vector<1x32x128xf32>
    %79 = vector.shape_cast %78 : vector<1x32x128xf32> to vector<32x128xf32>
    %80 = vector.shape_cast %77 : vector<32x128xf32> to vector<1x32x128xf32>
    tpu.vector_store %arg8[%c0_43, %c0_44, %c0_45], %80 {strides = array<i32>} : memref<2x32x128xf32, #tpu.memory_space<vmem>>, vector<1x32x128xf32>,
    %81 = vector.extract_strided_slice %4 {offsets = [8, 0], sizes = [8, 128], strides = [1, 1]} : vector<16x128xf32> to vector<8x128xf32>
    %82 = vector.extract_strided_slice %7 {offsets = [8, 0], sizes = [8, 128], strides = [1, 1]} : vector<16x128xf32> to vector<8x128xf32>
    %83 = vector.extract_strided_slice %10 {offsets = [8, 0], sizes = [8, 128], strides = [1, 1]} : vector<16x128xf32> to vector<8x128xf32>
    %84 = vector.extract_strided_slice %13 {offsets = [8, 0], sizes = [8, 128], strides = [1, 1]} : vector<16x128xf32> to vector<8x128xf32>
    %85 = vector.extract_strided_slice %16 {offsets = [8, 0], sizes = [8, 128], strides = [1, 1]} : vector<16x128xf32> to vector<8x128xf32>
    %86 = vector.extract_strided_slice %19 {offsets = [8, 0], sizes = [8, 128], strides = [1, 1]} : vector<16x128xf32> to vector<8x128xf32>
    %87 = tpu.concatenate %81, %82, %83, %84, %85, %86 in 0 : vector<8x128xf32>, vector<8x128xf32>, vector<8x128xf32>, vector<8x128xf32>, vector<8x128xf32>, vector<8x128xf32> -> vector<48x128xf32>
    %88 = arith.truncf %87 : vector<48x128xf32> to vector<48x128xbf16>
    %cst_46 = arith.constant dense<0.000000e+00> : vector<32x128xf32>
    %89 = tpu.matmul %20, %88, %cst_46 {dimension_numbers = #tpu.dot_dimension_numbers<[1], [0], [0], [1], [0, 0, 1, 1], [], []>} : vector<32x48xbf16>, vector<48x128xbf16>, vector<32x128xf32> -> vector<32x128xf32>
    %90 = arith.addf %89, %21 : vector<32x128xf32>
    %cst_47 = arith.constant 0.000000e+00 : f32
    %91 = vector.broadcast %cst_47 : f32 to vector<32x128xf32>
    %92 = arith.maximumf %90, %91 : vector<32x128xf32>
    %cst_48 = arith.constant 0.000000e+00 : f32
    %93 = vector.broadcast %cst_48 : f32 to vector<32x128xf32>
    %c16_i32_49 = arith.constant 16 : i32
    %94 = tpu.dynamic_rotate %92 by %c16_i32_49 dim 1 : vector<32x128xf32>, i32 -> vector<32x128xf32>
    %cst_50 = arith.constant 0.000000e+00 : f32
    %95 = vector.broadcast %cst_50 : f32 to vector<32x128xf32>
    %96 = arith.select %30, %94, %95 : vector<32x128xi1>, vector<32x128xf32>
    %97 = vector.extract_strided_slice %22 {offsets = [0, 0, 0], sizes = [1, 32, 32], strides = [1, 1, 1]} : vector<3x32x32xbf16> to vector<1x32x32xbf16>
    %98 = vector.shape_cast %97 : vector<1x32x32xbf16> to vector<32x32xbf16>
    %99 = arith.truncf %96 : vector<32x128xf32> to vector<32x128xbf16>
    %cst_51 = arith.constant dense<0.000000e+00> : vector<32x128xf32>
    %100 = tpu.matmul %98, %99, %cst_51 {dimension_numbers = #tpu.dot_dimension_numbers<[1], [0], [0], [1], [0, 0, 1, 1], [], []>} : vector<32x32xbf16>, vector<32x128xbf16>, vector<32x128xf32> -> vector<32x128xf32>
    %101 = arith.addf %93, %100 : vector<32x128xf32>
    %102 = vector.extract_strided_slice %22 {offsets = [1, 0, 0], sizes = [1, 32, 32], strides = [1, 1, 1]} : vector<3x32x32xbf16> to vector<1x32x32xbf16>
    %103 = vector.shape_cast %102 : vector<1x32x32xbf16> to vector<32x32xbf16>
    %104 = arith.truncf %92 : vector<32x128xf32> to vector<32x128xbf16>
    %cst_52 = arith.constant dense<0.000000e+00> : vector<32x128xf32>
    %105 = tpu.matmul %103, %104, %cst_52 {dimension_numbers = #tpu.dot_dimension_numbers<[1], [0], [0], [1], [0, 0, 1, 1], [], []>} : vector<32x32xbf16>, vector<32x128xbf16>, vector<32x128xf32> -> vector<32x128xf32>
    %106 = arith.addf %101, %105 : vector<32x128xf32>
    %c112_i32_53 = arith.constant 112 : i32
    %107 = tpu.dynamic_rotate %92 by %c112_i32_53 dim 1 : vector<32x128xf32>, i32 -> vector<32x128xf32>
    %cst_54 = arith.constant 0.000000e+00 : f32
    %108 = vector.broadcast %cst_54 : f32 to vector<32x128xf32>
    %109 = arith.select %35, %107, %108 : vector<32x128xi1>, vector<32x128xf32>
    %110 = vector.extract_strided_slice %22 {offsets = [2, 0, 0], sizes = [1, 32, 32], strides = [1, 1, 1]} : vector<3x32x32xbf16> to vector<1x32x32xbf16>
    %111 = vector.shape_cast %110 : vector<1x32x32xbf16> to vector<32x32xbf16>
    %112 = arith.truncf %109 : vector<32x128xf32> to vector<32x128xbf16>
    %cst_55 = arith.constant dense<0.000000e+00> : vector<32x128xf32>
    %113 = tpu.matmul %111, %112, %cst_55 {dimension_numbers = #tpu.dot_dimension_numbers<[1], [0], [0], [1], [0, 0, 1, 1], [], []>} : vector<32x32xbf16>, vector<32x128xbf16>, vector<32x128xf32> -> vector<32x128xf32>
    %114 = arith.addf %106, %113 : vector<32x128xf32>
    %115 = vector.extract_strided_slice %0 {offsets = [1, 0, 0], sizes = [1, 8, 128], strides = [1, 1, 1]} : vector<2x8x128xbf16> to vector<1x8x128xbf16>
    %116 = vector.shape_cast %115 : vector<1x8x128xbf16> to vector<8x128xbf16>
    %cst_56 = arith.constant dense<0.000000e+00> : vector<32x128xf32>
    %117 = tpu.matmul %23, %116, %cst_56 {dimension_numbers = #tpu.dot_dimension_numbers<[1], [0], [0], [1], [0, 0, 1, 1], [], []>} : vector<32x8xbf16>, vector<8x128xbf16>, vector<32x128xf32> -> vector<32x128xf32>
    %118 = arith.addf %114, %117 : vector<32x128xf32>
    %119 = vector.broadcast %24 : vector<32x1xf32> to vector<32x128xf32>
    %120 = arith.addf %118, %119 : vector<32x128xf32>
    %cst_57 = arith.constant 0.000000e+00 : f32
    %121 = vector.broadcast %cst_57 : f32 to vector<32x128xf32>
    %122 = arith.maximumf %120, %121 : vector<32x128xf32>
    %c1_58 = arith.constant 1 : index
    %c0_59 = arith.constant 0 : index
    %c0_60 = arith.constant 0 : index
    %123 = vector.load %arg8[%c1_58, %c0_59, %c0_60] : memref<2x32x128xf32, #tpu.memory_space<vmem>>, vector<1x32x128xf32>
    %124 = vector.shape_cast %123 : vector<1x32x128xf32> to vector<32x128xf32>
    %125 = vector.shape_cast %122 : vector<32x128xf32> to vector<1x32x128xf32>
    tpu.vector_store %arg8[%c1_58, %c0_59, %c0_60], %125 {strides = array<i32>} : memref<2x32x128xf32, #tpu.memory_space<vmem>>, vector<1x32x128xf32>,
    return
  }
  func.func @transform_0(%arg0: i32) -> (i32, i32, i32) {
    %c0_i32 = arith.constant 0 : i32
    %c0_i32_0 = arith.constant 0 : i32
    %c0_i32_1 = arith.constant 0 : i32
    return %arg0, %c0_i32, %c0_i32_0 : i32, i32, i32
  }
  func.func @transform_1(%arg0: i32) -> (i32, i32, i32) {
    %c0_i32 = arith.constant 0 : i32
    %c0_i32_0 = arith.constant 0 : i32
    %c0_i32_1 = arith.constant 0 : i32
    %c0_i32_2 = arith.constant 0 : i32
    return %c0_i32, %c0_i32_0, %c0_i32_1 : i32, i32, i32
  }
  func.func @transform_2(%arg0: i32) -> (i32, i32) {
    %c0_i32 = arith.constant 0 : i32
    %c0_i32_0 = arith.constant 0 : i32
    %c0_i32_1 = arith.constant 0 : i32
    return %c0_i32, %c0_i32_0 : i32, i32
  }
  func.func @transform_3(%arg0: i32) -> (i32, i32) {
    %c0_i32 = arith.constant 0 : i32
    %c0_i32_0 = arith.constant 0 : i32
    %c0_i32_1 = arith.constant 0 : i32
    return %c0_i32, %c0_i32_0 : i32, i32
  }
  func.func @transform_4(%arg0: i32) -> (i32, i32, i32) {
    %c0_i32 = arith.constant 0 : i32
    %c0_i32_0 = arith.constant 0 : i32
    %c0_i32_1 = arith.constant 0 : i32
    %c0_i32_2 = arith.constant 0 : i32
    return %c0_i32, %c0_i32_0, %c0_i32_1 : i32, i32, i32
  }
  func.func @transform_5(%arg0: i32) -> (i32, i32) {
    %c0_i32 = arith.constant 0 : i32
    %c0_i32_0 = arith.constant 0 : i32
    %c0_i32_1 = arith.constant 0 : i32
    return %c0_i32, %c0_i32_0 : i32, i32
  }
  func.func @transform_6(%arg0: i32) -> (i32, i32) {
    %c0_i32 = arith.constant 0 : i32
    %c0_i32_0 = arith.constant 0 : i32
    %c0_i32_1 = arith.constant 0 : i32
    return %c0_i32, %c0_i32_0 : i32, i32
  }
  func.func @transform_7(%arg0: i32) -> (i32, i32, i32) {
    %c0_i32 = arith.constant 0 : i32
    %c0_i32_0 = arith.constant 0 : i32
    %c0_i32_1 = arith.constant 0 : i32
    return %arg0, %c0_i32, %c0_i32_0 : i32, i32, i32
  }
}

</mosaic_0001>

<bundles_post_ra>
// kernel: tpu_custom_call.1
= control target key start
LH: loop header
LB: loop body
LE: loop exit
PB: predicated region body
PF: predicated region fallthrough
CT: control target
= control target key end

     0   :  { %6 = vsyncpa [#allocation3], 0  ;;  %s128_s0 = inlined_call_operand.hbm [shape: f32[8,128], index: 0, kind: input, shape index: {}]   ;;  %s129_s1 = inlined_call_operand.hbm [shape: f32[8,128], index: 1, kind: output, shape index: {}]  }
   0x1   :  { %7 = vsyncpa [#allocation4], 0  ;;  %s91_s6 = smov [#allocation2]   ;;  %s43_s10 = scalar_lea.hbm %s128_s0, 128 }
   0x2   :  { %s14_s7 = sshll.u32 %s91_s6, 4  ;;  %p44_p0 = scmp.ne.s32.totalorder %s128_s0, %s43_s10  ;;  %s15_s7 = int_to_ptr.vmem [resolvable:$true] %s14_s7 }
   0x3   :  { %p47_p1 = scmp.lt.u32.totalorder %s43_s10, %s128_s0 }
   0x5   :  { %p49_p2 = pnand %p47_p1, %p44_p0 }
   0x7   :  { %52 = shalt.err (!%p49_p2)
}
   0x8   :  { %s53_s15 = scalar_lea.vmem %s15_s7, 128  ;;  %p58_p4 = scmp.lt.s32.totalorder %s15_s7, %s15_s7 }
   0x9   :  { %p54_p3 = scmp.ne.s32.totalorder %s15_s7, %s53_s15  ;;  %p59_p5 = scmp.lt.s32.totalorder %s53_s15, %s53_s15 }
   0xb   :  { %p60_p6 = por %p59_p5, %p58_p4 }
   0xd   :  { %p61_p7 = pnand %p60_p6, %p54_p3 }
   0xf   :  { %64 = shalt.err (!%p61_p7)
}
  0x10   :  { %17 = dma.hbm_to_vmem [thread:$0]  %s128_s0, 128, %s15_s7, [#allocation3]  }
  0x11   :  { %87 = dma.done.wait [#allocation3], 128  }
  0x12   :  { %88 = vsyncadd [#allocation3], 4294967168  ;;  %v21_v0 = vld [vmem:[#allocation2] sm:$0xff]  ;;  %s92_s18 = smov 3   ;;  %s93_s19 = smov [#allocation5]  }
  0x13   :  { %22 = vrot.lane.b32.xlu0 %v21_v0, %s92_s18  ;;  %s31_s20 = sshll.u32 %s93_s19, 4  ;;  %s32_s20 = int_to_ptr.vmem [resolvable:$true] %s31_s20 }
  0x14   :  { %s65_s21 = scalar_lea.vmem %s32_s20, 128  ;;  %p70_p9 = scmp.lt.s32.totalorder %s32_s20, %s32_s20 }
  0x15   :  { %p66_p8 = scmp.ne.s32.totalorder %s32_s20, %s65_s21  ;;  %p71_p10 = scmp.lt.s32.totalorder %s65_s21, %s65_s21 }
  0x17   :  { %p72_p11 = por %p71_p10, %p70_p9 }
  0x19   :  { %p73_p12 = pnand %p72_p11, %p66_p8 }
  0x85   :  { %v23_v1 = vpop.permute.xlu0 %22 }
  0x86   :  { %24 = vst [vmem:[#allocation5] sm:$0xff] %v23_v1 }
  0x87   :  { %76 = shalt.err (!%p73_p12)
}
  0x88   :  { %s77_s0 = scalar_lea.hbm %s129_s1, 128 }
  0x89   :  { %p78_p13 = scmp.ne.s32.totalorder %s129_s1, %s77_s0  ;;  %p81_p0 = scmp.lt.u32.totalorder %s77_s0, %s129_s1 }
  0x8b   :  { %p83_p1 = pnand %p81_p0, %p78_p13 }
  0x8d   :  { %86 = shalt.err (!%p83_p1)
}
  0x8e   :  { %34 = dma.vmem_to_hbm [thread:$0]  %s32_s20, 128, %s129_s1, [#allocation4]  }
  0x8f   :  { %89 = dma.done.wait [#allocation4], 128  }
  0x90   :  { %90 = vsyncadd [#allocation4], 4294967168 }
  0x91   :  { %38 = vsyncpa [#allocation3], 1 }
  0x92   :  { %39 = vsyncpa [#allocation4], 1 }

// kernel: tpu_custom_call.1
= control target key start
LH: loop header
LB: loop body
LE: loop exit
PB: predicated region body
PF: predicated region fallthrough
CT: control target
= control target key end

     0   :  { %12 = vsyncpa [#allocation3], 0  ;;  %s3044_s0 = inlined_call_operand.vmem [shape: bf16[4,8,128], index: 0, kind: input, shape index: {}]   ;;  %s3045_s1 = inlined_call_operand.hbm [shape: bf16[6,128,128], index: 1, kind: input, shape index: {}]   ;;  %s3046_s2 = inlined_call_operand.hbm [shape: bf16[32,48], index: 2, kind: input, shape index: {}]   ;;  %s3047_s3 = inlined_call_operand.hbm [shape: f32[32,128], index: 3, kind: input, shape index: {}]   ;;  %s3048_s4 = inlined_call_operand.vmem [shape: bf16[3,32,32], index: 4, kind: input, shape index: {}]   ;;  %s3049_s5 = inlined_call_operand.vmem [shape: bf16[32,8], index: 5, kind: input, shape index: {}]   ;;  %s3050_s6 = inlined_call_operand.vmem [shape: f32[32,1], index: 6, kind: input, shape index: {}]   ;;  %s3051_s7 = inlined_call_operand.hbm [shape: f32[4,32,128], index: 7, kind: output, shape index: {}]  }
   0x1   :  { %13 = vsyncpa [#allocation6], 0 }
   0x2   :  { %14 = vsyncpa [#allocation4], 0 }
   0x3   :  { %16 = vsyncpa [#allocation4 + $0x1], 0  ;;  %s2668_s24 = smov 0   ;;  %s2670_s25 = smov 0  }
   0x4   :  { %s2672_s26 = smov 0   ;;  %s2674_s27 = smov 0  }
   0x5 LB: > { %3058 = sst [smem:[#allocation12_spill]] %s2607_s26  ;;  %s2689_s28 = sadd.s32 4294967295, %s2611_s27   ;;  %s2611_s27 = sphi %s2674_s27, %s3077_s27   ;;  %s2607_s26 = sphi %s2672_s26, %s3079_s26   ;;  %s2603_s25 = sphi %s2670_s25, %s3081_s25   ;;  %s2599_s24 = sphi %s2668_s24, %s3080_s24  }
   0x6   : > { %s1827_s29 = sadd.s32 4294967294, %s2611_s27   ;;  %s2693_s30 = sadd.s32 1, %s2611_s27  }
   0x7   : > { %3059 = sst [smem:[#allocation13_spill]] %s2693_s30  ;;  %s181_s8 = sadd.s32 1, %s2607_s26 }
   0x8   : > { %s178_s9 = ssub.s32 %s2611_s27, %s2693_s30  ;;  %p191_p0 = scmp.ne.s32.totalorder %s2607_s26, %s2603_s25 }
   0x9   : > { %p179_p1 = scmp.eq.s32.totalorder %s178_s9, 0  ;;  %p192_p2 = scmp.eq.s32.totalorder %s2689_s28, 1 }
   0xa   : > { %p197_p3 = scmp.ne.s32.totalorder %s2603_s25, %s2599_s24  ;;  %p198_p4 = scmp.eq.s32.totalorder %s1827_s29, 1 }
   0xb   : > { %s2704_s10 = scalar_select %p179_p1, %s2607_s26, %s181_s8  }
   0xc   : > { %p2706_p5 = por %p192_p2, %p191_p0  ;;  %p2710_p6 = por %p198_p4, %p197_p3 }
   0xd   : > { %3060 = sst [smem:[#allocation14_spill]] %s2704_s10  ;;  %p1828_p7 = scmp.ge.s32.totalorder %s2611_s27, 1 }
   0xe   : > { %s3061_s11 = scalar_select %p2706_p5, 1, 0 }
   0xf   : > { %s3062_s12 = scalar_select %p2710_p6, 1, 0 }
  0x10   : > { %p205_p8 = scmp.lt.s32.totalorder %s2611_s27, 3  ;;  %p3052_p9 = scmp.eq.s32.totalorder %s2689_s28, 0 }
  0x11   : > { %s2613_s14 = smov [#allocation5]   ;;  %s2614_s17 = smov [#allocation2]  }
  0x12   : > { %p2717_p10 = pnand %p1828_p7, %p205_p8  ;;  %s230_s15 = sshll.u32 %s2613_s14, 4  ;;  %s2723_s15 = int_to_ptr.vmem [resolvable:$true] %s230_s15 }
  0x13   : > { %s217_s18 = sshll.u32 %s2614_s17, 4  ;;  %s2615_s19 = smov [#allocation7]   ;;  %s2731_s18 = int_to_ptr.vmem [resolvable:$true] %s217_s18 }
  0x14   : > { %s3063_s13 = scalar_select %p2717_p10, 1, 0 }
  0x15   : > { %p2289_p11 = pneg %p2717_p10  ;;  %s2733_s20 = sshll.u32 %s2615_s19, 4  ;;  %s244_s20 = int_to_ptr.vmem [resolvable:$true] %s2733_s20 }
  0x16   : > { %s2457_s23 = scalar_lea.hbm %s3046_s2, 256 }
  0x17   : > { %p2727_p12 = pnand %p3052_p9, %p2289_p11  ;;  %p2458_p13 = scmp.ne.s32.totalorder %s3046_s2, %s2457_s23 }
  0x18   : > { %p2464_p3 = scmp.lt.u32.totalorder %s2457_s23, %s3046_s2 }
  0x19   : > { %p2743_p0 = pneg %p2727_p12 }
  0x1b   : > { %p2460_p1 = pnand %p2743_p0, %p2458_p13 }
  0x1d   : > { %p2461_p2 = pneg %p2460_p1 }
  0x1f   : > { %p2466_p4 = pnand %p2464_p3, %p2461_p2 }
  0x21   : > { %2469 = shalt.err (!%p2466_p4)
}
  0x22   : > { %s2470_s19 = scalar_lea.vmem %s2723_s15, 256  ;;  %p2478_p9 = scmp.lt.s32.totalorder %s2723_s15, %s2723_s15 }
  0x23   : > { %p2471_p7 = scmp.ne.s32.totalorder %s2723_s15, %s2470_s19  ;;  %p2479_p6 = scmp.lt.s32.totalorder %s2470_s19, %s2470_s19 }
  0x25   : > { %p2473_p8 = pnand %p2471_p7, %p2743_p0  ;;  %p2480_p13 = por %p2479_p6, %p2478_p9 }
  0x27   : > { %p2474_p11 = pneg %p2473_p8 }
  0x29   : > { %p2481_p1 = pnand %p2480_p13, %p2474_p11 }
  0x2b   : > { %2484 = shalt.err (!%p2481_p1)
}
  0x2c   : > { %s2616_s21 = smov 64   ;;  %s2617_s22 = smov 4  }
  0x2d   : > { %2295 = dma.hbm_to_vmem [thread:$0]  (!%p2727_p12), %s3046_s2, 256, %s2723_s15, [#allocation6], %s2616_s21, %s2616_s21, %s2617_s22  }
  0x2e   : > { %s2485_s17 = scalar_lea.hbm %s3045_s1, 6144 }
  0x2f   : > { %p2486_p6 = scmp.ne.s32.totalorder %s3045_s1, %s2485_s17  ;;  %p2492_p3 = scmp.lt.u32.totalorder %s2485_s17, %s3045_s1 }
  0x31   : > { %p2488_p9 = pnand %p2486_p6, %p2743_p0 }
  0x33   : > { %p2489_p2 = pneg %p2488_p9 }
  0x35   : > { %p2494_p4 = pnand %p2492_p3, %p2489_p2 }
  0x37   : > { %2497 = shalt.err (!%p2494_p4)
}
  0x38   : > { %s2498_s15 = scalar_lea.vmem %s2731_s18, 6144  ;;  %p2506_p13 = scmp.lt.s32.totalorder %s2731_s18, %s2731_s18 }
  0x39   : > { %p2499_p7 = scmp.ne.s32.totalorder %s2731_s18, %s2498_s15  ;;  %p2507_p1 = scmp.lt.s32.totalorder %s2498_s15, %s2498_s15 }
  0x3b   : > { %p2501_p8 = pnand %p2499_p7, %p2743_p0  ;;  %p2508_p6 = por %p2507_p1, %p2506_p13 }
  0x3d   : > { %p2502_p11 = pneg %p2501_p8 }
  0x3f   : > { %p2509_p9 = pnand %p2508_p6, %p2502_p11 }
  0x41   : > { %2512 = shalt.err (!%p2509_p9)
}
  0x42   : > { %2292 = dma.hbm_to_vmem [thread:$0]  (!%p2727_p12), %s3045_s1, 6144, %s2731_s18, [#allocation3], %s2616_s21, %s2616_s21, %s2617_s22  }
  0x43   : > { %s2513_s29 = scalar_lea.hbm %s3047_s3, 512 }
  0x44   : > { %p2514_p2 = scmp.ne.s32.totalorder %s3047_s3, %s2513_s29  ;;  %p2520_p7 = scmp.lt.u32.totalorder %s2513_s29, %s3047_s3 }
  0x46   : > { %p2516_p3 = pnand %p2514_p2, %p2743_p0 }
  0x48   : > { %p2517_p4 = pneg %p2516_p3 }
  0x4a   : > { %p2522_p8 = pnand %p2520_p7, %p2517_p4 }
  0x4c   : > { %2525 = shalt.err (!%p2522_p8)
}
  0x4d   : > { %s2526_s15 = scalar_lea.vmem %s244_s20, 512  ;;  %p2534_p6 = scmp.lt.s32.totalorder %s244_s20, %s244_s20 }
  0x4e   : > { %p2527_p11 = scmp.ne.s32.totalorder %s244_s20, %s2526_s15  ;;  %p2535_p9 = scmp.lt.s32.totalorder %s2526_s15, %s2526_s15 }
  0x50   : > { %p2529_p13 = pnand %p2527_p11, %p2743_p0  ;;  %p2536_p5 = por %p2535_p9, %p2534_p6 }
  0x52   : > { %p2530_p1 = pneg %p2529_p13 }
  0x54   : > { %p2537_p10 = pnand %p2536_p5, %p2530_p1 }
  0x56   : > { %2540 = shalt.err (!%p2537_p10)
}
  0x57   : > { %s2618_s18 = smov 128   ;;  %s2619_s21 = smov 8  }
  0x58   : > { %2298 = dma.hbm_to_vmem [thread:$0]  (!%p2727_p12), %s3047_s3, 512, %s244_s20, [#allocation6], %s2618_s18, %s2618_s18, %s2619_s21  }
  0x59   : > { %p3066_p2 = scmp.ne.s32.totalorder %s3063_s13, 0 }
  0x5a   : > { %p3067_p3 = scmp.eq.s32.totalorder (!%p3066_p2), %s2689_s28, 0 }
  0x5b   : > { %277 = sbr.rel (%p3066_p2) target bundleno = 1029 (0x405), region = 48 }
  0x62   : > { %2586 = dma.done.wait (%p3067_p3), [#allocation3], 6144   ;;  %p3068_p0 = pmov %p3067_p3 }
  0x64   : > { %2588 = vsyncadd (%p3068_p0), [#allocation3], 4294961152  ;;  %p3069_p5 = pmov %p3068_p0 }
  0x65   : > { %p3070_p10 = pmov %p3068_p0 }
  0x66   : > { %2590 = dma.done.wait (%p3069_p5), [#allocation6], 768  }
  0x67   : > { %2592 = vsyncadd (%p3070_p10), [#allocation6], 4294966528  ;;  %v2620_v0 = vmov 0.0   ;;  %vm2621_vm0 = vmmov 0   ;;  %v2398_v1 = vld [vmem:[#allocation2] sm:$0xff]   ;;  %v2400_v3 = vld [vmem:[#allocation2 + $0x8] sm:$0xff]  }
  0x68   : > { %2049 = vmatprep.subr.bf16.mxu0 %v2620_v0  ;;  %2069 = vmatprep.subr.bf16.mxu1 %v2620_v0  ;;  %v2399_v2 = vld [vmem:[#allocation2 + $0x40] sm:$0xff]   ;;  %v2401_v4 = vld [vmem:[#allocation2 + $0x48] sm:$0xff]   ;;  %v2402_v5 = vld [vmem:[#allocation2 + $0x10] sm:$0xff]   ;;  %s1838_s13 = sshll.u32 %s2689_s28, 1  ;;  %vm1017_vm1 = vcmask 392192   ;;  %vm1103_vm2 = vcmask 261120  }
  0x69   : > { %2065 = vmatprep.mubr.msk.bf16.mxu0 %vm2621_vm0, %v2620_v0  ;;  %2085 = vmatprep.mubr.msk.bf16.mxu1 %vm2621_vm0, %v2620_v0  ;;  %v2403_v6 = vld [vmem:[#allocation2 + $0x50] sm:$0xff]   ;;  %v2404_v7 = vld [vmem:[#allocation2 + $0x18] sm:$0xff]   ;;  %p318_p12 = scmp.lt.s32.totalorder %s1838_s13, 3  ;;  %v2406_v9 = vld [vmem:[#allocation2 + $0x20] sm:$0xff]   ;;  %s2622_s29 = smov 16   ;;  %vm1324_vm7 = vcmask 1043456  }
  0x6a   : > { %2050 = vmatpush3.bf16.msra.mxu0 %v2398_v1  ;;  %2070 = vmatpush3.bf16.msra.mxu1 %v2399_v2  ;;  %v2405_v8 = vld [vmem:[#allocation2 + $0x58] sm:$0xff]   ;;  %v2407_v10 = vld [vmem:[#allocation2 + $0x60] sm:$0xff]   ;;  %v2408_v11 = vld [vmem:[#allocation2 + $0x28] sm:$0xff]   ;;  %s2623_s15 = smov 112   ;;  %vm1317_vm8 = vcmask 64512   ;;  %s314_s21 = sand.u32 1, %s2603_s25  }
  0x6b   : > { %2051 = vmatprep.subr.bf16.mxu0 %v2620_v0  ;;  %2071 = vmatprep.subr.bf16.mxu1 %v2620_v0  ;;  %s3083_s13 = smov (!%p318_p12, %s1838_s13), 3  ;;  %v2409_v12 = vld [vmem:[#allocation2 + $0x68] sm:$0xff]   ;;  %v2410_v13 = vld [vmem:[#allocation2 + $0x30] sm:$0xff]   ;;  %v2412_v15 = vld [vmem:[#allocation2 + $0x38] sm:$0xff]   ;;  %s1837_s22 = sshll.u32 %s314_s21, 6 }
  0x6c   : > { %s1839_s16 = sshll.u32 %s3083_s13, 2  ;;  %v2411_v14 = vld [vmem:[#allocation2 + $0x70] sm:$0xff]   ;;  %v2413_v18 = vld [vmem:[#allocation2 + $0x78] sm:$0xff]   ;;  %v2415_v20 = vld [vmem:[#allocation2 + $0x80] sm:$0xff]   ;;  %s316_s26 = scalar_lea.vmem [#allocation8], %s1837_s22 }
  0x6d   : > { %s321_s30 = scalar_lea.vmem %s3044_s0, %s1839_s16  ;;  %v2416_v21 = vld [vmem:[#allocation2 + $0xc0] sm:$0xff]   ;;  %v2417_v22 = vld [vmem:[#allocation2 + $0x88] sm:$0xff]   ;;  %v2419_v24 = vld [vmem:[#allocation2 + $0x90] sm:$0xff]   ;;  %s1734_s13 = sshll.u32 %s316_s26, 4  ;;  %s2994_s13 = int_to_ptr.vmem [resolvable:$true] %s1734_s13 }
  0x6e   : > { %2052 = vmatpush3.bf16.msra.mxu0 %v2400_v3  ;;  %2072 = vmatpush3.bf16.msra.mxu1 %v2401_v4  ;;  %v2838_v16 = vld [vmem:[%s321_s30] sm:$0xf]  ;;  %v2840_v17 = vld [vmem:[%s321_s30 + $0x4] sm:$0xf]  ;;  %v2418_v23 = vld [vmem:[#allocation2 + $0xc8] sm:$0xff]   ;;  %s1954_s16 = sshll.u32 %s2689_s28, 10 }
  0x6f   : > { %2053 = vmatprep.subr.bf16.mxu0 %v2620_v0  ;;  %2073 = vmatprep.subr.bf16.mxu1 %v2620_v0  ;;  %v2846_v19 = vcombine.low %v2838_v16, %v2840_v17  ;;  %v2420_v25 = vld [vmem:[#allocation2 + $0xd0] sm:$0xff]   ;;  %v2421_v26 = vld [vmem:[#allocation2 + $0x98] sm:$0xff]   ;;  %v2423_v28 = vld [vmem:[#allocation2 + $0xa0] sm:$0xff]   ;;  %s2999_s28 = scalar_lea.hbm %s3051_s7, %s1954_s16  ;;  %s3003_s30 = scalar_lea.sflag [#allocation4], %s314_s21 }
  0x70   : > { %v2422_v27 = vld [vmem:[#allocation2 + $0xd8] sm:$0xff]   ;;  %v2424_v29 = vld [vmem:[#allocation2 + $0xe0] sm:$0xff]   ;;  %v2425_v30 = vld [vmem:[#allocation2 + $0xa8] sm:$0xff]   ;;  %s2541_s10 = scalar_lea.vmem %s2994_s13, 1024  ;;  %p3075_p7 = scmp.ne.s32.totalorder %s3061_s11, 0 }
  0x71   : > { %v2426_v31 = vld [vmem:[#allocation2 + $0xe8] sm:$0xff]   ;;  %v2427_v32 = vld [vmem:[#allocation2 + $0xb0] sm:$0xff]   ;;  %v2429_v34 = vld [vmem:[#allocation2 + $0xb8] sm:$0xff]   ;;  %p2542_p4 = scmp.ne.s32.totalorder %s2994_s13, %s2541_s10  ;;  %s2625_s23 = smov [#allocation8]  }
  0x72   : > { %2054 = vmatpush3.bf16.msra.mxu0 %v2402_v5  ;;  %2074 = vmatpush3.bf16.msra.mxu1 %v2403_v6  ;;  %v2428_v33 = vld [vmem:[#allocation2 + $0xf0] sm:$0xff]   ;;  %v2430_v35 = vld [vmem:[#allocation2 + $0xf8] sm:$0xff]   ;;  %v2431_v36 = vld [vmem:[#allocation2 + $0x100] sm:$0xff]  }
  0x73   : > { %2055 = vmatprep.subr.bf16.mxu0 %v2620_v0  ;;  %2075 = vmatprep.subr.bf16.mxu1 %v2620_v0  ;;  %v2432_v37 = vld [vmem:[#allocation2 + $0x140] sm:$0xff]   ;;  %v2433_v38 = vld [vmem:[#allocation2 + $0x108] sm:$0xff]   ;;  %v2435_v40 = vld [vmem:[#allocation2 + $0x110] sm:$0xff]   ;;  %p2543_p8 = pnand %p2542_p4, %p3075_p7 }
  0x74   : > { %v2434_v39 = vld [vmem:[#allocation2 + $0x148] sm:$0xff]   ;;  %v2436_v41 = vld [vmem:[#allocation2 + $0x150] sm:$0xff]   ;;  %v2437_v42 = vld [vmem:[#allocation2 + $0x118] sm:$0xff]  }
  0x75   : > { %v2438_v43 = vld [vmem:[#allocation2 + $0x158] sm:$0xff]   ;;  %v2439_v44 = vld [vmem:[#allocation2 + $0x120] sm:$0xff]   ;;  %v2441_v46 = vld [vmem:[#allocation2 + $0x128] sm:$0xff]   ;;  %p2544_p11 = pneg %p2543_p8 }
  0x76   : > { %2056 = vmatpush3.bf16.msra.mxu0 %v2404_v7  ;;  %2076 = vmatpush3.bf16.msra.mxu1 %v2405_v8  ;;  %v2440_v45 = vld [vmem:[#allocation2 + $0x160] sm:$0xff]   ;;  %v2442_v47 = vld [vmem:[#allocation2 + $0x168] sm:$0xff]   ;;  %v2443_v48 = vld [vmem:[#allocation2 + $0x130] sm:$0xff]  }
  0x77   : > { %2057 = vmatprep.subr.bf16.mxu0 %v2620_v0  ;;  %2077 = vmatprep.subr.bf16.mxu1 %v2620_v0  ;;  %v2444_v49 = vld [vmem:[#allocation2 + $0x170] sm:$0xff]   ;;  %v2445_v50 = vld [vmem:[#allocation2 + $0x138] sm:$0xff]   ;;  %v2447_v52 = vld [vmem:[#allocation5] sm:$0xff]  }
  0x78   : > { %v2446_v51 = vld [vmem:[#allocation2 + $0x178] sm:$0xff]  }
  0x7a   : > { %2058 = vmatpush3.bf16.msra.mxu0 %v2406_v9  ;;  %2078 = vmatpush3.bf16.msra.mxu1 %v2407_v10 }
  0x7b   : > { %2059 = vmatprep.subr.bf16.mxu0 %v2620_v0  ;;  %2079 = vmatprep.subr.bf16.mxu1 %v2620_v0 }
  0x7e   : > { %2060 = vmatpush3.bf16.msra.mxu0 %v2408_v11  ;;  %2080 = vmatpush3.bf16.msra.mxu1 %v2409_v12 }
  0x7f   : > { %2061 = vmatprep.subr.bf16.mxu0 %v2620_v0  ;;  %2081 = vmatprep.subr.bf16.mxu1 %v2620_v0 }
  0x82   : > { %2062 = vmatpush3.bf16.msra.mxu0 %v2410_v13  ;;  %2082 = vmatpush3.bf16.msra.mxu1 %v2411_v14 }
  0x83   : > { %2063 = vmatprep.subr.bf16.mxu0 %v2620_v0  ;;  %2083 = vmatprep.subr.bf16.mxu1 %v2620_v0 }
  0x86   : > { %2064 = vmatpush3.bf16.msra.mxu0 %v2412_v15  ;;  %2084 = vmatpush3.bf16.msra.mxu1 %v2413_v18 }
  0x87   : > { %2089 = vmatprep.subr.bf16.mxu0 %v2620_v0  ;;  %2109 = vmatprep.subr.bf16.mxu1 %v2620_v0 }
  0x89   : > { %2066 = vmatmul.mubr.bf16.vlgmr.msra.gmra.mrb[0].mxu0 %v2846_v19  ;;  %2086 = vmatmul.mubr.bf16.vlgmr.msra.gmra.mrb[0].mxu1 %v2846_v19 }
  0x8a   : > { %2090 = vmatpush3.bf16.msra.mxu0 %v2415_v20  ;;  %2110 = vmatpush3.bf16.msra.mxu1 %v2416_v21  ;;  %v2448_v21 = vld [vmem:[#allocation5 + $0x8] sm:$0xff]  }
  0x8b   : > { %2091 = vmatprep.subr.bf16.mxu0 %v2620_v0  ;;  %2111 = vmatprep.subr.bf16.mxu1 %v2620_v0 }
  0x8c   : > { %2105 = vmatprep.mubr.msk.bf16.mxu0 %vm2621_vm0, %v2620_v0  ;;  %2125 = vmatprep.mubr.msk.bf16.mxu1 %vm2621_vm0, %v2620_v0 }
  0x8e   : > { %2092 = vmatpush3.bf16.msra.mxu0 %v2417_v22  ;;  %2112 = vmatpush3.bf16.msra.mxu1 %v2418_v23  ;;  %v2449_v22 = vld [vmem:[%s3048_s4 + $0x10] sm:$0xff]   ;;  %v974_v23 = vld [vmem:[#allocation7 + $0x10] sm:$0xff] }
  0x8f   : > { %2093 = vmatprep.subr.bf16.mxu0 %v2620_v0  ;;  %2113 = vmatprep.subr.bf16.mxu1 %v2620_v0 }
  0x92   : > { %2094 = vmatpush3.bf16.msra.mxu0 %v2419_v24  ;;  %2114 = vmatpush3.bf16.msra.mxu1 %v2420_v25  ;;  %v972_v24 = vld [vmem:[#allocation7] sm:$0xff] }
  0x93   : > { %2095 = vmatprep.subr.bf16.mxu0 %v2620_v0  ;;  %2115 = vmatprep.subr.bf16.mxu1 %v2620_v0 }
  0x96   : > { %2096 = vmatpush3.bf16.msra.mxu0 %v2421_v26  ;;  %2116 = vmatpush3.bf16.msra.mxu1 %v2422_v27  ;;  %v975_v26 = vld [vmem:[#allocation7 + $0x18] sm:$0xff] }
  0x97   : > { %2097 = vmatprep.subr.bf16.mxu0 %v2620_v0  ;;  %2117 = vmatprep.subr.bf16.mxu1 %v2620_v0 }
  0x9a   : > { %2098 = vmatpush3.bf16.msra.mxu0 %v2423_v28  ;;  %2118 = vmatpush3.bf16.msra.mxu1 %v2424_v29  ;;  %v973_v29 = vld [vmem:[#allocation7 + $0x8] sm:$0xff] }
  0x9b   : > { %2099 = vmatprep.subr.bf16.mxu0 %v2620_v0  ;;  %2119 = vmatprep.subr.bf16.mxu1 %v2620_v0 }
  0x9e   : > { %2100 = vmatpush3.bf16.msra.mxu0 %v2425_v30  ;;  %2120 = vmatpush3.bf16.msra.mxu1 %v2426_v31 }
  0x9f   : > { %2101 = vmatprep.subr.bf16.mxu0 %v2620_v0  ;;  %2121 = vmatprep.subr.bf16.mxu1 %v2620_v0 }
  0xa2   : > { %2102 = vmatpush3.bf16.msra.mxu0 %v2427_v32  ;;  %2122 = vmatpush3.bf16.msra.mxu1 %v2428_v33 }
  0xa3   : > { %2103 = vmatprep.subr.bf16.mxu0 %v2620_v0  ;;  %2123 = vmatprep.subr.bf16.mxu1 %v2620_v0 }
  0xa6   : > { %2104 = vmatpush3.bf16.msra.mxu0 %v2429_v34  ;;  %2124 = vmatpush3.bf16.msra.mxu1 %v2430_v35 }
  0xa7   : > { %2129 = vmatprep.subr.bf16.mxu0 %v2620_v0  ;;  %2149 = vmatprep.subr.bf16.mxu1 %v2620_v0 }
  0xa9   : > { %2106 = vmatmul.mubr.bf16.vlgmr.msra.gmra.mrb[4].mxu0 %v2846_v19  ;;  %2126 = vmatmul.mubr.bf16.vlgmr.msra.gmra.mrb[4].mxu1 %v2846_v19 }
  0xaa   : > { %2130 = vmatpush3.bf16.msra.mxu0 %v2431_v36  ;;  %2150 = vmatpush3.bf16.msra.mxu1 %v2432_v37 }
  0xab   : > { %2131 = vmatprep.subr.bf16.mxu0 %v2620_v0  ;;  %2151 = vmatprep.subr.bf16.mxu1 %v2620_v0 }
  0xac   : > { %2145 = vmatprep.mubr.msk.bf16.mxu0 %vm2621_vm0, %v2620_v0  ;;  %2165 = vmatprep.mubr.msk.bf16.mxu1 %vm2621_vm0, %v2620_v0 }
  0xae   : > { %2132 = vmatpush3.bf16.msra.mxu0 %v2433_v38  ;;  %2152 = vmatpush3.bf16.msra.mxu1 %v2434_v39 }
  0xaf   : > { %2133 = vmatprep.subr.bf16.mxu0 %v2620_v0  ;;  %2153 = vmatprep.subr.bf16.mxu1 %v2620_v0 }
  0xb2   : > { %2134 = vmatpush3.bf16.msra.mxu0 %v2435_v40  ;;  %2154 = vmatpush3.bf16.msra.mxu1 %v2436_v41 }
  0xb3   : > { %2135 = vmatprep.subr.bf16.mxu0 %v2620_v0  ;;  %2155 = vmatprep.subr.bf16.mxu1 %v2620_v0 }
  0xb6   : > { %2136 = vmatpush3.bf16.msra.mxu0 %v2437_v42  ;;  %2156 = vmatpush3.bf16.msra.mxu1 %v2438_v43 }
  0xb7   : > { %2137 = vmatprep.subr.bf16.mxu0 %v2620_v0  ;;  %2157 = vmatprep.subr.bf16.mxu1 %v2620_v0 }
  0xba   : > { %2138 = vmatpush3.bf16.msra.mxu0 %v2439_v44  ;;  %2158 = vmatpush3.bf16.msra.mxu1 %v2440_v45 }
  0xbb   : > { %2139 = vmatprep.subr.bf16.mxu0 %v2620_v0  ;;  %2159 = vmatprep.subr.bf16.mxu1 %v2620_v0 }
  0xbe   : > { %2140 = vmatpush3.bf16.msra.mxu0 %v2441_v46  ;;  %2160 = vmatpush3.bf16.msra.mxu1 %v2442_v47 }
  0xbf   : > { %2141 = vmatprep.subr.bf16.mxu0 %v2620_v0  ;;  %2161 = vmatprep.subr.bf16.mxu1 %v2620_v0 }
  0xc2   : > { %2142 = vmatpush3.bf16.msra.mxu0 %v2443_v48  ;;  %2162 = vmatpush3.bf16.msra.mxu1 %v2444_v49 }
  0xc3   : > { %2143 = vmatprep.subr.bf16.mxu0 %v2620_v0  ;;  %2163 = vmatprep.subr.bf16.mxu1 %v2620_v0 }
  0xc6   : > { %2144 = vmatpush3.bf16.msra.mxu0 %v2445_v50  ;;  %2164 = vmatpush3.bf16.msra.mxu1 %v2446_v51 }
  0xc9   : > { %2146 = vmatmul.mubr.bf16.vlgmr.msra.gmra.mrb[8].mxu0 %v2846_v19  ;;  %2166 = vmatmul.mubr.bf16.vlgmr.msra.gmra.mrb[8].mxu1 %v2846_v19 }
  0xca   : > { %2175 = vmatprep.mubr.msk.bf16.mxu1 %vm1017_vm1, %v2447_v52  ;;  %2215 = vmatprep.mubr.msk.bf16.mxu0 %vm1017_vm1, %v2447_v52 }
 0x15c   : > { %v431_v53 = vpop.f32.mrb[0].mxu0  ;;  %v537_v54 = vpop.f32.mrb[0].mxu1 }
 0x15d   : > { %v2067_v55 = vpop.f32.mrb[1].mxu0  ;;  %v1004_v56 = vpack.c.bf16 %v537_v54, %v431_v53  ;;  %v2087_v57 = vpop.f32.mrb[1].mxu1 }
 0x15e   : > { %v434_v58 = vpop.f32.mrb[2].mxu0  ;;  %v540_v59 = vpop.f32.mrb[2].mxu1 }
 0x15f   : > { %v2068_v60 = vpop.f32.mrb[3].mxu0  ;;  %v1413_v61 = vpack.c.bf16 %v540_v59, %v434_v58  ;;  %v2088_v62 = vpop.f32.mrb[3].mxu1  ;;  %2169 = vmatprep.subr.bf16.mxu1 %v1004_v56  ;;  %v2450_v59 = vld [vmem:[%s3048_s4 + $0x18] sm:$0xff]  }
 0x160   : > { %2170 = vmatpush3.bf16.msra.mxu1 %v1004_v56  ;;  %v2451_v60 = vld [vmem:[%s3048_s4] sm:$0xff]  }
 0x161   : > { %2209 = vmatprep.subr.bf16.mxu0 %v1413_v61  ;;  %v992_v62 = vld [vmem:[%s3050_s6] sm:$0xff] }
 0x162   : > { %2210 = vmatpush3.bf16.msra.mxu0 %v1413_v61  ;;  %v993_v61 = vld [vmem:[%s3050_s6 + $0x8] sm:$0xff] }
 0x17c   : > { %v643_v63 = vpop.f32.mrb[4].mxu0  ;;  %v749_v0 = vpop.f32.mrb[4].mxu1 }
 0x17d   : > { %v2107_v1 = vpop.f32.mrb[5].mxu0  ;;  %v1005_v2 = vpack.c.bf16 %v749_v0, %v643_v63  ;;  %v2127_v3 = vpop.f32.mrb[5].mxu1  ;;  %v2624_v63 = vmov 0   ;;  %v994_v0 = vld [vmem:[%s3050_s6 + $0x10] sm:$0xff] }
 0x17e   : > { %v646_v4 = vpop.f32.mrb[6].mxu0  ;;  %v752_v5 = vpop.f32.mrb[6].mxu1  ;;  %2397 = vset.pattern.permute.xlu1 %v2624_v63  ;;  %2396 = vset.pattern.permute.xlu0 %v2624_v63  ;;  %v995_v1 = vld [vmem:[%s3050_s6 + $0x18] sm:$0xff] }
 0x17f   : > { %v2108_v6 = vpop.f32.mrb[7].mxu0  ;;  %v1414_v7 = vpack.c.bf16 %v752_v5, %v646_v4  ;;  %v2128_v8 = vpop.f32.mrb[7].mxu1  ;;  %2171 = vmatprep.subr.bf16.mxu1 %v1005_v2 }
 0x180   : > { %2172 = vmatpush3.bf16.msra.mxu1 %v1005_v2  ;;  %v996_v2 = vlaneseq }
 0x181   : > { %2211 = vmatprep.subr.bf16.mxu0 %v1414_v7 }
 0x182   : > { %2212 = vmatpush3.bf16.msra.mxu0 %v1414_v7  ;;  %v997_v3 = vand.u32 127, %v996_v2 }
 0x184   : > { %vm998_vm3 = vcmp.ge.s32.totalorder %v997_v3, 16  ;;  %vm1002_vm5 = vcmp.lt.s32.totalorder %v997_v3, 112 }
 0x185   : > { %vm2925_vm4 = vmpackc.low %vm998_vm3, %vm998_vm3 }
 0x186   : > { %vm2944_vm6 = vmpackc.low %vm1002_vm5, %vm1002_vm5 }
 0x19c   : > { %v855_v9 = vpop.f32.mrb[8].mxu0  ;;  %v961_v10 = vpop.f32.mrb[8].mxu1 }
 0x19d   : > { %v2147_v11 = vpop.f32.mrb[9].mxu0  ;;  %v1006_v12 = vpack.c.bf16 %v961_v10, %v855_v9  ;;  %v2167_v13 = vpop.f32.mrb[9].mxu1 }
 0x19e   : > { %v858_v14 = vpop.f32.mrb[10].mxu0  ;;  %v964_v15 = vpop.f32.mrb[10].mxu1 }
 0x19f   : > { %v2148_v18 = vpop.f32.mrb[11].mxu0  ;;  %v1415_v19 = vpack.c.bf16 %v964_v15, %v858_v14  ;;  %v2168_v20 = vpop.f32.mrb[11].mxu1  ;;  %2173 = vmatprep.subr.bf16.mxu1 %v1006_v12 }
 0x1a0   : > { %2174 = vmatpush3.bf16.msra.mxu1 %v1006_v12 }
 0x1a1   : > { %2213 = vmatprep.subr.bf16.mxu0 %v1415_v19 }
 0x1a2   : > { %2214 = vmatpush3.bf16.msra.mxu0 %v1415_v19 }
 0x1a3   : > { %2176 = vmatmul.mubr.msk.bf16.vlgmr.msra.gmra.mrb[12].mxu1 %vm1017_vm1, %v2448_v21 }
 0x1a4   : > { %2183 = vmatprep.mubr.msk.bf16.mxu1 %vm1103_vm2, %v2449_v22 }
 0x1a5   : > { %2216 = vmatmul.mubr.msk.bf16.vlgmr.msra.gmra.mrb[12].mxu0 %vm1017_vm1, %v2448_v21 }
 0x1a6   : > { %2223 = vmatprep.mubr.msk.bf16.mxu0 %vm1103_vm2, %v2449_v22 }
 0x276   : > { %v2177_v25 = vpop.f32.mrb[12].mxu1 }
 0x277   : > { %v1067_v27 = vadd.f32 %v2177_v25, %v974_v23  ;;  %v1058_v28 = vpop.f32.mrb[13].mxu1 }
 0x278   : > { %v1059_v30 = vadd.f32 %v1058_v28, %v972_v24  ;;  %v2178_v31 = vpop.f32.mrb[14].mxu1  ;;  %v2217_v32 = vpop.f32.mrb[12].mxu0 }
 0x279   : > { %v1070_v33 = vadd.f32 %v2178_v31, %v975_v26  ;;  %v1459_v34 = vadd.f32 %v2217_v32, %v974_v23  ;;  %v1061_v35 = vpop.f32.mrb[15].mxu1  ;;  %v1450_v36 = vpop.f32.mrb[13].mxu0  ;;  %v1075_v40 = vmax.f32 %v1067_v27, 0.0 }
 0x27a   : > { %v1062_v37 = vadd.f32 %v1061_v35, %v973_v29  ;;  %v1451_v38 = vadd.f32 %v1450_v36, %v972_v24  ;;  %v2218_v39 = vpop.f32.mrb[14].mxu0  ;;  %v1073_v45 = vmax.f32 %v1059_v30, 0.0 }
 0x27b   : > { %v1076_v41 = vmax.f32 %v1070_v33, 0.0  ;;  %v1467_v42 = vmax.f32 %v1459_v34, 0.0  ;;  %v1462_v43 = vadd.f32 %v2218_v39, %v975_v26  ;;  %v1453_v44 = vpop.f32.mrb[15].mxu0  ;;  %v2453_v33 = vld [vmem:[%s3048_s4 + $0x20] sm:$0xff]  }
 0x27c   : > { %v1074_v46 = vmax.f32 %v1062_v37, 0.0  ;;  %v1465_v47 = vmax.f32 %v1451_v38, 0.0  ;;  %v1454_v48 = vadd.f32 %v1453_v44, %v973_v29  ;;  %v2452_v29 = vld [vmem:[%s3048_s4 + $0x8] sm:$0xff]   ;;  %v1326_v44 = vsel %vm1324_vm7, %v2838_v16, 0 }
 0x27d   : > { %v1468_v49 = vmax.f32 %v1462_v43, 0.0  ;;  %v2366_v50 = vpack.i.bf16 %v1076_v41, %v1075_v40  ;;  %v1092_v51 = vpack.c.bf16 %v1076_v41, %v1075_v40  ;;  %v2455_v43 = vld [vmem:[%s3049_s5] sm:$0xff]  }
 0x27e   : > { %v1466_v52 = vmax.f32 %v1454_v48, 0.0  ;;  %v2356_v53 = vpack.i.bf16 %v1074_v46, %v1073_v45  ;;  %v1091_v54 = vpack.c.bf16 %v1074_v46, %v1073_v45  ;;  %v1651_v45 = vsel %vm1324_vm7, %v2840_v17, 0  ;;  %v2456_v46 = vld [vmem:[%s3049_s5 + $0x8] sm:$0xff]  }
 0x27f   : > { %2367 = vrot.lane.b32.xlu1 %v2366_v50, %s2622_s29  ;;  %v2371_v55 = vpack.i.bf16 %v1468_v49, %v1467_v42  ;;  %v1484_v56 = vpack.c.bf16 %v1468_v49, %v1467_v42  ;;  %v2454_v42 = vld [vmem:[%s3048_s4 + $0x28] sm:$0xff]  }
 0x280   : > { %2357 = vrot.lane.b32.xlu0 %v2356_v53, %s2622_s29  ;;  %2179 = vmatprep.subr.bf16.mxu1 %v1091_v54  ;;  %v1483_v57 = vpack.c.bf16 %v1466_v52, %v1465_v47  ;;  %v2361_v58 = vpack.i.bf16 %v1466_v52, %v1465_v47 }
 0x281   : > { %2180 = vmatpush3.bf16.msra.mxu1 %v1091_v54 }
 0x282   : > { %2181 = vmatprep.subr.bf16.mxu1 %v1092_v51  ;;  %2219 = vmatprep.subr.bf16.mxu0 %v1483_v57 }
 0x283   : > { %2372 = vrot.lane.b32.xlu1 %v2371_v55, %s2622_s29  ;;  %2220 = vmatpush3.bf16.msra.mxu0 %v1483_v57 }
 0x284   : > { %2362 = vrot.lane.b32.xlu0 %v2361_v58, %s2622_s29  ;;  %2221 = vmatprep.subr.bf16.mxu0 %v1484_v56  ;;  %s2545_s29 = sshll.u32 %s2625_s23, 4  ;;  %s2546_s29 = int_to_ptr.vmem [resolvable:$false] %s2545_s29 }
 0x285   : > { %2182 = vmatpush3.bf16.msra.mxu1 %v1092_v51  ;;  %s2547_s8 = scalar_lea.vmem %s2546_s29, 2048  ;;  %p2548_p13 = scmp.lt.s32.totalorder %s2994_s13, %s2546_s29 }
 0x286   : > { %p2549_p1 = scmp.lt.s32.totalorder %s2547_s8, %s2541_s10 }
 0x287   : > { %2387 = vrot.lane.b32.xlu1 %v2361_v58, %s2623_s15  ;;  %2222 = vmatpush3.bf16.msra.mxu0 %v1484_v56 }
 0x288   : > { %2377 = vrot.lane.b32.xlu0 %v2356_v53, %s2623_s15  ;;  %2184 = vmatmul.mubr.msk.bf16.vlgmr.msra.gmra.mrb[16].mxu1 %vm1103_vm2, %v2450_v59  ;;  %p2550_p6 = por %p2549_p1, %p2548_p13 }
 0x289   : > { %2191 = vmatprep.mubr.msk.bf16.mxu1 %vm1103_vm2, %v2451_v60 }
 0x28a   : > { %2224 = vmatmul.mubr.msk.bf16.vlgmr.msra.gmra.mrb[16].mxu0 %vm1103_vm2, %v2450_v59  ;;  %p2551_p9 = pnand %p2550_p6, %p2544_p11 }
 0x28b   : > { %2392 = vrot.lane.b32.xlu1 %v2371_v55, %s2623_s15  ;;  %2231 = vmatprep.mubr.msk.bf16.mxu0 %vm1103_vm2, %v2451_v60 }
 0x28c   : > { %2382 = vrot.lane.b32.xlu0 %v2366_v50, %s2623_s15 }
 0x28f   : > { %1388 = vperm.xlu1 %2397, %v993_v61  }
 0x290   : > { %1383 = vperm.xlu0 %2396, %v992_v62  }
 0x293   : > { %1393 = vperm.xlu1 %2397, %v994_v0  }
 0x294   : > { %1398 = vperm.xlu0 %2396, %v995_v1  }
 0x2f1   : > { %v2368_v4 = vpop.permute.xlu1 %2367 }
 0x2f2   : > { %v2370_v5 = vunpack.i.h.bf16 %v2368_v4  ;;  %v2369_v6 = vunpack.i.l.bf16 %v2368_v4  ;;  %v2358_v7 = vpop.permute.xlu0 %2357 }
 0x2f3   : > { %v2360_v8 = vunpack.i.h.bf16 %v2358_v7  ;;  %v2359_v9 = vunpack.i.l.bf16 %v2358_v7 }
 0x2f4   : > { %v1903_v13 = vpack.c.bf16 %v2370_v5, %v2369_v6 }
 0x2f5   : > { %v1900_v11 = vpack.c.bf16 %v2360_v8, %v2359_v9  ;;  %v2373_v12 = vpop.permute.xlu1 %2372 }
 0x2f6   : > { %v2363_v14 = vpop.permute.xlu0 %2362  ;;  %v2375_v15 = vunpack.i.h.bf16 %v2373_v12  ;;  %v2374_v18 = vunpack.i.l.bf16 %v2373_v12 }
 0x2f7   : > { %v2365_v19 = vunpack.i.h.bf16 %v2363_v14  ;;  %v2364_v20 = vunpack.i.l.bf16 %v2363_v14  ;;  %2187 = vmatprep.subr.msk.bf16.mxu1 %vm2925_vm4, %v1900_v11 }
 0x2f8   : > { %2188 = vmatpush3.bf16.msk.msra.mxu1 %vm2925_vm4, %v1900_v11  ;;  %v1929_v26 = vpack.c.bf16 %v2375_v15, %v2374_v18 }
 0x2f9   : > { %v1926_v21 = vpack.c.bf16 %v2365_v19, %v2364_v20  ;;  %2189 = vmatprep.subr.msk.bf16.mxu1 %vm2925_vm4, %v1903_v13  ;;  %v2388_v22 = vpop.permute.xlu1 %2387 }
 0x2fa   : > { %v2390_v23 = vunpack.i.h.bf16 %v2388_v22  ;;  %v2389_v24 = vunpack.i.l.bf16 %v2388_v22  ;;  %v2378_v25 = vpop.permute.xlu0 %2377 }
 0x2fb   : > { %v2380_v27 = vunpack.i.h.bf16 %v2378_v25  ;;  %v2379_v28 = vunpack.i.l.bf16 %v2378_v25  ;;  %2227 = vmatprep.subr.msk.bf16.mxu0 %vm2925_vm4, %v1926_v21 }
 0x2fc   : > { %2190 = vmatpush3.bf16.msk.msra.mxu1 %vm2925_vm4, %v1903_v13  ;;  %2228 = vmatpush3.bf16.msk.msra.mxu0 %vm2925_vm4, %v1926_v21  ;;  %v1934_v34 = vpack.c.bf16 %v2390_v23, %v2389_v24 }
 0x2fd   : > { %v1910_v31 = vpack.c.bf16 %v2380_v27, %v2379_v28  ;;  %v2393_v32 = vpop.permute.xlu1 %2392  ;;  %2229 = vmatprep.subr.msk.bf16.mxu0 %vm2925_vm4, %v1929_v26 }
 0x2fe   : > { %v2383_v35 = vpop.permute.xlu0 %2382  ;;  %v2395_v36 = vunpack.i.h.bf16 %v2393_v32  ;;  %v2394_v37 = vunpack.i.l.bf16 %v2393_v32 }
 0x2ff   : > { %v2385_v38 = vunpack.i.h.bf16 %v2383_v35  ;;  %v2384_v39 = vunpack.i.l.bf16 %v2383_v35  ;;  %2192 = vmatmul.mubr.msk.bf16.vlgmr.msra.gmra.mrb[16].mxu1 %vm1103_vm2, %v2452_v29  ;;  %2195 = vmatprep.subr.msk.bf16.mxu1 %vm2944_vm6, %v1910_v31 }
 0x300   : > { %2196 = vmatpush3.bf16.msk.msra.mxu1 %vm2944_vm6, %v1910_v31  ;;  %2230 = vmatpush3.bf16.msk.msra.mxu0 %vm2925_vm4, %v1929_v26  ;;  %v1937_v41 = vpack.c.bf16 %v2395_v36, %v2394_v37 }
 0x301   : > { %v1913_v40 = vpack.c.bf16 %v2385_v38, %v2384_v39  ;;  %2235 = vmatprep.subr.msk.bf16.mxu0 %vm2944_vm6, %v1934_v34  ;;  %2199 = vmatprep.mubr.msk.bf16.mxu1 %vm1103_vm2, %v2453_v33 }
 0x303   : > { %2197 = vmatprep.subr.msk.bf16.mxu1 %vm2944_vm6, %v1913_v40  ;;  %2232 = vmatmul.mubr.msk.bf16.vlgmr.msra.gmra.mrb[16].mxu0 %vm1103_vm2, %v2452_v29 }
 0x304   : > { %2198 = vmatpush3.bf16.msk.msra.mxu1 %vm2944_vm6, %v1913_v40  ;;  %2236 = vmatpush3.bf16.msk.msra.mxu0 %vm2944_vm6, %v1934_v34 }
 0x305   : > { %2237 = vmatprep.subr.msk.bf16.mxu0 %vm2944_vm6, %v1937_v41  ;;  %2239 = vmatprep.mubr.msk.bf16.mxu0 %vm1103_vm2, %v2453_v33 }
 0x306   : > { %2273 = vmatprep.subr.msk.bf16.mxu1 %vm1324_vm7, %v2838_v16 }
 0x308   : > { %2238 = vmatpush3.bf16.msk.msra.mxu0 %vm2944_vm6, %v1937_v41 }
 0x309   : > { %2274 = vmatprep.subr.msk.bf16.mxu0 %vm1324_vm7, %v2840_v17 }
 0x30b   : > { %2200 = vmatmul.mubr.msk.bf16.vlgmr.msra.gmra.mrb[16].mxu1 %vm1103_vm2, %v2454_v42 }
 0x30c   : > { %2204 = vmatpush3.bf16.msra.mxu1 %v1326_v44  ;;  %2205 = vmatprep.mubr.msk.bf16.mxu1 %vm1317_vm8, %v2455_v43 }
 0x30e   : > { %v1389_v47 = vpop.permute.xlu1 %1388 }
 0x30f   : > { %2240 = vmatmul.mubr.msk.bf16.vlgmr.msra.gmra.mrb[16].mxu0 %vm1103_vm2, %v2454_v42  ;;  %v1384_v16 = vpop.permute.xlu0 %1383 }
 0x310   : > { %2244 = vmatpush3.bf16.msra.mxu0 %v1651_v45  ;;  %2245 = vmatprep.mubr.msk.bf16.mxu0 %vm1317_vm8, %v2455_v43 }
 0x312   : > { %v1394_v48 = vpop.permute.xlu1 %1393 }
 0x313   : > { %v1399_v50 = vpop.permute.xlu0 %1398 }
 0x317   : > { %2206 = vmatmul.mubr.msk.bf16.vlgmr.msra.gmra.mrb[16].mxu1 %vm1317_vm8, %v2456_v46 }
 0x31b   : > { %2246 = vmatmul.mubr.msk.bf16.vlgmr.msra.gmra.mrb[16].mxu0 %vm1317_vm8, %v2456_v46 }
 0x3ea   : > { %v2207_v49 = vpop.f32.mrb[16].mxu1 }
 0x3eb   : > { %v1403_v51 = vadd.f32 %v2207_v49, %v1394_v48  ;;  %v1362_v17 = vpop.f32.mrb[17].mxu1 }
 0x3ec   : > { %v1401_v52 = vadd.f32 %v1384_v16, %v1362_v17  ;;  %v2208_v53 = vpop.f32.mrb[18].mxu1 }
 0x3ed   : > { %v1407_v54 = vmax.f32 %v1403_v51, 0.0  ;;  %v1404_v55 = vadd.f32 %v2208_v53, %v1399_v50  ;;  %v1365_v56 = vpop.f32.mrb[19].mxu1 }
 0x3ee   : > { %v1405_v57 = vmax.f32 %v1401_v52, 0.0  ;;  %v1402_v58 = vadd.f32 %v1389_v47, %v1365_v56  ;;  %v2247_v59 = vpop.f32.mrb[16].mxu0 }
 0x3ef   : > { %1411 = vst [vmem:[%s316_s26 + $0x10] sm:$0xff] %v1407_v54  ;;  %v1408_v60 = vmax.f32 %v1404_v55, 0.0  ;;  %v1708_v61 = vadd.f32 %v2247_v59, %v1394_v48  ;;  %v1687_v62 = vpop.f32.mrb[17].mxu0 }
 0x3f0   : > { %1409 = vst [vmem:[%s316_s26] sm:$0xff] %v1405_v57  ;;  %v1406_v63 = vmax.f32 %v1402_v58, 0.0  ;;  %v1706_v0 = vadd.f32 %v1687_v62, %v1384_v16  ;;  %v2248_v1 = vpop.f32.mrb[18].mxu0 }
 0x3f1   : > { %1412 = vst [vmem:[%s316_s26 + $0x18] sm:$0xff] %v1408_v60  ;;  %v1712_v2 = vmax.f32 %v1708_v61, 0.0  ;;  %v1709_v3 = vadd.f32 %v2248_v1, %v1399_v50  ;;  %v1690_v4 = vpop.f32.mrb[19].mxu0 }
 0x3f2   : > { %1410 = vst [vmem:[%s316_s26 + $0x8] sm:$0xff] %v1406_v63  ;;  %v1710_v5 = vmax.f32 %v1706_v0, 0.0  ;;  %v1707_v6 = vadd.f32 %v1690_v4, %v1389_v47 }
 0x3f3   : > { %1945 = vst [vmem:[%s316_s26 + $0x30] sm:$0xff] %v1712_v2  ;;  %v1713_v7 = vmax.f32 %v1709_v3, 0.0 }
 0x3f4   : > { %1943 = vst [vmem:[%s316_s26 + $0x20] sm:$0xff] %v1710_v5  ;;  %v1711_v8 = vmax.f32 %v1707_v6, 0.0 }
 0x3f5   : > { %1946 = vst [vmem:[%s316_s26 + $0x38] sm:$0xff] %v1713_v7 }
 0x3f6   : > { %1944 = vst [vmem:[%s316_s26 + $0x28] sm:$0xff] %v1711_v8 }
 0x3f7   : > { %2554 = shalt.err (!%p2551_p9)
}
 0x3f8   : > { %s2555_s14 = scalar_lea.hbm %s2999_s28, 1024  ;;  %s2559_s15 = scalar_lea.hbm %s3051_s7, 2048 }
 0x3f9   : > { %p2556_p2 = scmp.ne.s32.totalorder %s2999_s28, %s2555_s14  ;;  %p2560_p5 = scmp.lt.u32.totalorder %s2999_s28, %s3051_s7 }
 0x3fa   : > { %p2561_p10 = scmp.lt.u32.totalorder %s2559_s15, %s2555_s14  ;;  %p2563_p4 = scmp.lt.u32.totalorder %s2555_s14, %s2999_s28 }
 0x3fb   : > { %p2557_p3 = pnand %p2556_p2, %p3075_p7 }
 0x3fc   : > { %p2562_p12 = por %p2561_p10, %p2560_p5 }
 0x3fd   : > { %p2558_p0 = pneg %p2557_p3 }
 0x3fe   : > { %p2564_p8 = por %p2563_p4, %p2562_p12 }
 0x400   : > { %p2565_p11 = pnand %p2564_p8, %p2558_p0 }
 0x402   : > { %2568 = shalt.err (!%p2565_p11)
}
 0x403   : > { %s2626_s22 = smov 128   ;;  %s2627_s26 = smov 8  }
 0x404   : > { %2287 = dma.vmem_to_hbm [thread:$0]  (%p3075_p7), %s2994_s13, 1024, %s2999_s28, %s3003_s30, %s2626_s22, %s2626_s22, %s2627_s26  }
 0x405 PF: > { %p2309_p13 = scmp.ge.s32.totalorder %s2611_s27, 2  ;;  %s1749_s16 = sand.u32 1, %s2599_s24  }
 0x406   : > { %p3076_p1 = scmp.ne.s32.totalorder %s3062_s12, 0  ;;  %s1750_s20 = scalar_lea.sflag [#allocation4], %s1749_s16 }
 0x408   : > { %p2300_p6 = pnand %p2309_p13, %p3076_p1 }
 0x40a   : > { %2594 = dma.done.wait (!%p2300_p6), %s1750_s20, 1024  }
 0x40b   : > { %2596 = vsyncadd (!%p2300_p6), %s1750_s20, 4294966272  ;;  %s3077_s27 = sld [smem:[#allocation13_spill]]  ;;  %s3078_s9 = sld [smem:[#allocation12_spill]] }
 0x40c   : > { %s3079_s26 = sld [smem:[#allocation14_spill]]  ;;  %s3080_s24 = smov %s2603_s25 }
 0x411   : > { %p19_p9 = scmp.ge.s32.totalorder %s3077_s27, 4   ;;  %s3081_s25 = smov %s3078_s9 }
 0x413   :  { %21 = sbr.rel (!%p19_p9) target bundleno = 5 (0x5), region = 102 }
 0x41a   :  { %1755 = vsyncpa [#allocation3], 1 }
 0x41b   :  { %1757 = vsyncpa [#allocation3 + $0x1], 1 }
 0x41c   :  { %1758 = vsyncpa [#allocation6], 1 }
 0x41d   :  { %1759 = vsyncpa [#allocation4], 1 }
 0x41e   :  { %1761 = vsyncpa [#allocation4 + $0x1], 1 }

// kernel: tpu_custom_call.1
= control target key start
LH: loop header
LB: loop body
LE: loop exit
PB: predicated region body
PF: predicated region fallthrough
CT: control target
= control target key end

     0   :  { %12 = vsyncpa [#allocation3], 0  ;;  %s3044_s0 = inlined_call_operand.vmem [shape: bf16[4,8,128], index: 0, kind: input, shape index: {}]   ;;  %s3045_s1 = inlined_call_operand.hbm [shape: bf16[6,128,128], index: 1, kind: input, shape index: {}]   ;;  %s3046_s2 = inlined_call_operand.hbm [shape: bf16[32,48], index: 2, kind: input, shape index: {}]   ;;  %s3047_s3 = inlined_call_operand.hbm [shape: f32[32,128], index: 3, kind: input, shape index: {}]   ;;  %s3048_s4 = inlined_call_operand.vmem [shape: bf16[3,32,32], index: 4, kind: input, shape index: {}]   ;;  %s3049_s5 = inlined_call_operand.vmem [shape: bf16[32,8], index: 5, kind: input, shape index: {}]   ;;  %s3050_s6 = inlined_call_operand.vmem [shape: f32[32,1], index: 6, kind: input, shape index: {}]   ;;  %s3051_s7 = inlined_call_operand.hbm [shape: f32[4,32,128], index: 7, kind: output, shape index: {}]  }
   0x1   :  { %13 = vsyncpa [#allocation6], 0 }
   0x2   :  { %14 = vsyncpa [#allocation4], 0 }
   0x3   :  { %16 = vsyncpa [#allocation4 + $0x1], 0  ;;  %s2668_s24 = smov 0   ;;  %s2670_s25 = smov 0  }
   0x4   :  { %s2672_s26 = smov 0   ;;  %s2674_s27 = smov 0  }
   0x5 LB: > { %3058 = sst [smem:[#allocation12_spill]] %s2607_s26  ;;  %s2689_s28 = sadd.s32 4294967295, %s2611_s27   ;;  %s2611_s27 = sphi %s2674_s27, %s3077_s27   ;;  %s2607_s26 = sphi %s2672_s26, %s3079_s26   ;;  %s2603_s25 = sphi %s2670_s25, %s3081_s25   ;;  %s2599_s24 = sphi %s2668_s24, %s3080_s24  }
   0x6   : > { %s1827_s29 = sadd.s32 4294967294, %s2611_s27   ;;  %s2693_s30 = sadd.s32 1, %s2611_s27  }
   0x7   : > { %3059 = sst [smem:[#allocation13_spill]] %s2693_s30  ;;  %s181_s8 = sadd.s32 1, %s2607_s26 }
   0x8   : > { %s178_s9 = ssub.s32 %s2611_s27, %s2693_s30  ;;  %p191_p0 = scmp.ne.s32.totalorder %s2607_s26, %s2603_s25 }
   0x9   : > { %p179_p1 = scmp.eq.s32.totalorder %s178_s9, 0  ;;  %p192_p2 = scmp.eq.s32.totalorder %s2689_s28, 1 }
   0xa   : > { %p197_p3 = scmp.ne.s32.totalorder %s2603_s25, %s2599_s24  ;;  %p198_p4 = scmp.eq.s32.totalorder %s1827_s29, 1 }
   0xb   : > { %s2704_s10 = scalar_select %p179_p1, %s2607_s26, %s181_s8  }
   0xc   : > { %p2706_p5 = por %p192_p2, %p191_p0  ;;  %p2710_p6 = por %p198_p4, %p197_p3 }
   0xd   : > { %3060 = sst [smem:[#allocation14_spill]] %s2704_s10  ;;  %p1828_p7 = scmp.ge.s32.totalorder %s2611_s27, 1 }
   0xe   : > { %s3061_s11 = scalar_select %p2706_p5, 1, 0 }
   0xf   : > { %s3062_s12 = scalar_select %p2710_p6, 1, 0 }
  0x10   : > { %p205_p8 = scmp.lt.s32.totalorder %s2611_s27, 3  ;;  %p3052_p9 = scmp.eq.s32.totalorder %s2689_s28, 0 }
  0x11   : > { %s2613_s14 = smov [#allocation5]   ;;  %s2614_s17 = smov [#allocation2]  }
  0x12   : > { %p2717_p10 = pnand %p1828_p7, %p205_p8  ;;  %s230_s15 = sshll.u32 %s2613_s14, 4  ;;  %s2723_s15 = int_to_ptr.vmem [resolvable:$true] %s230_s15 }
  0x13   : > { %s217_s18 = sshll.u32 %s2614_s17, 4  ;;  %s2615_s19 = smov [#allocation7]   ;;  %s2731_s18 = int_to_ptr.vmem [resolvable:$true] %s217_s18 }
  0x14   : > { %s3063_s13 = scalar_select %p2717_p10, 1, 0 }
  0x15   : > { %p2289_p11 = pneg %p2717_p10  ;;  %s2733_s20 = sshll.u32 %s2615_s19, 4  ;;  %s244_s20 = int_to_ptr.vmem [resolvable:$true] %s2733_s20 }
  0x16   : > { %s2457_s23 = scalar_lea.hbm %s3046_s2, 256 }
  0x17   : > { %p2727_p12 = pnand %p3052_p9, %p2289_p11  ;;  %p2458_p13 = scmp.ne.s32.totalorder %s3046_s2, %s2457_s23 }
  0x18   : > { %p2464_p3 = scmp.lt.u32.totalorder %s2457_s23, %s3046_s2 }
  0x19   : > { %p2743_p0 = pneg %p2727_p12 }
  0x1b   : > { %p2460_p1 = pnand %p2743_p0, %p2458_p13 }
  0x1d   : > { %p2461_p2 = pneg %p2460_p1 }
  0x1f   : > { %p2466_p4 = pnand %p2464_p3, %p2461_p2 }
  0x21   : > { %2469 = shalt.err (!%p2466_p4)
}
  0x22   : > { %s2470_s19 = scalar_lea.vmem %s2723_s15, 256  ;;  %p2478_p9 = scmp.lt.s32.totalorder %s2723_s15, %s2723_s15 }
  0x23   : > { %p2471_p7 = scmp.ne.s32.totalorder %s2723_s15, %s2470_s19  ;;  %p2479_p6 = scmp.lt.s32.totalorder %s2470_s19, %s2470_s19 }
  0x25   : > { %p2473_p8 = pnand %p2471_p7, %p2743_p0  ;;  %p2480_p13 = por %p2479_p6, %p2478_p9 }
  0x27   : > { %p2474_p11 = pneg %p2473_p8 }
  0x29   : > { %p2481_p1 = pnand %p2480_p13, %p2474_p11 }
  0x2b   : > { %2484 = shalt.err (!%p2481_p1)
}
  0x2c   : > { %s2616_s21 = smov 64   ;;  %s2617_s22 = smov 4  }
  0x2d   : > { %2295 = dma.hbm_to_vmem [thread:$0]  (!%p2727_p12), %s3046_s2, 256, %s2723_s15, [#allocation6], %s2616_s21, %s2616_s21, %s2617_s22  }
  0x2e   : > { %s2485_s17 = scalar_lea.hbm %s3045_s1, 6144 }
  0x2f   : > { %p2486_p6 = scmp.ne.s32.totalorder %s3045_s1, %s2485_s17  ;;  %p2492_p3 = scmp.lt.u32.totalorder %s2485_s17, %s3045_s1 }
  0x31   : > { %p2488_p9 = pnand %p2486_p6, %p2743_p0 }
  0x33   : > { %p2489_p2 = pneg %p2488_p9 }
  0x35   : > { %p2494_p4 = pnand %p2492_p3, %p2489_p2 }
  0x37   : > { %2497 = shalt.err (!%p2494_p4)
}
  0x38   : > { %s2498_s15 = scalar_lea.vmem %s2731_s18, 6144  ;;  %p2506_p13 = scmp.lt.s32.totalorder %s2731_s18, %s2731_s18 }
  0x39   : > { %p2499_p7 = scmp.ne.s32.totalorder %s2731_s18, %s2498_s15  ;;  %p2507_p1 = scmp.lt.s32.totalorder %s2498_s15, %s2498_s15 }
  0x3b   : > { %p2501_p8 = pnand %p2499_p7, %p2743_p0  ;;  %p2508_p6 = por %p2507_p1, %p2506_p13 }
  0x3d   : > { %p2502_p11 = pneg %p2501_p8 }
  0x3f   : > { %p2509_p9 = pnand %p2508_p6, %p2502_p11 }
  0x41   : > { %2512 = shalt.err (!%p2509_p9)
}
  0x42   : > { %2292 = dma.hbm_to_vmem [thread:$0]  (!%p2727_p12), %s3045_s1, 6144, %s2731_s18, [#allocation3], %s2616_s21, %s2616_s21, %s2617_s22  }
  0x43   : > { %s2513_s29 = scalar_lea.hbm %s3047_s3, 512 }
  0x44   : > { %p2514_p2 = scmp.ne.s32.totalorder %s3047_s3, %s2513_s29  ;;  %p2520_p7 = scmp.lt.u32.totalorder %s2513_s29, %s3047_s3 }
  0x46   : > { %p2516_p3 = pnand %p2514_p2, %p2743_p0 }
  0x48   : > { %p2517_p4 = pneg %p2516_p3 }
  0x4a   : > { %p2522_p8 = pnand %p2520_p7, %p2517_p4 }
  0x4c   : > { %2525 = shalt.err (!%p2522_p8)
}
  0x4d   : > { %s2526_s15 = scalar_lea.vmem %s244_s20, 512  ;;  %p2534_p6 = scmp.lt.s32.totalorder %s244_s20, %s244_s20 }
  0x4e   : > { %p2527_p11 = scmp.ne.s32.totalorder %s244_s20, %s2526_s15  ;;  %p2535_p9 = scmp.lt.s32.totalorder %s2526_s15, %s2526_s15 }
  0x50   : > { %p2529_p13 = pnand %p2527_p11, %p2743_p0  ;;  %p2536_p5 = por %p2535_p9, %p2534_p6 }
  0x52   : > { %p2530_p1 = pneg %p2529_p13 }
  0x54   : > { %p2537_p10 = pnand %p2536_p5, %p2530_p1 }
  0x56   : > { %2540 = shalt.err (!%p2537_p10)
}
  0x57   : > { %s2618_s18 = smov 128   ;;  %s2619_s21 = smov 8  }
  0x58   : > { %2298 = dma.hbm_to_vmem [thread:$0]  (!%p2727_p12), %s3047_s3, 512, %s244_s20, [#allocation6], %s2618_s18, %s2618_s18, %s2619_s21  }
  0x59   : > { %p3066_p2 = scmp.ne.s32.totalorder %s3063_s13, 0 }
  0x5a   : > { %p3067_p3 = scmp.eq.s32.totalorder (!%p3066_p2), %s2689_s28, 0 }
  0x5b   : > { %277 = sbr.rel (%p3066_p2) target bundleno = 1029 (0x405), region = 48 }
  0x62   : > { %2586 = dma.done.wait (%p3067_p3), [#allocation3], 6144   ;;  %p3068_p0 = pmov %p3067_p3 }
  0x64   : > { %2588 = vsyncadd (%p3068_p0), [#allocation3], 4294961152  ;;  %p3069_p5 = pmov %p3068_p0 }
  0x65   : > { %p3070_p10 = pmov %p3068_p0 }
  0x66   : > { %2590 = dma.done.wait (%p3069_p5), [#allocation6], 768  }
  0x67   : > { %2592 = vsyncadd (%p3070_p10), [#allocation6], 4294966528  ;;  %v2620_v0 = vmov 0.0   ;;  %vm2621_vm0 = vmmov 0   ;;  %v2398_v1 = vld [vmem:[#allocation2] sm:$0xff]   ;;  %v2400_v3 = vld [vmem:[#allocation2 + $0x8] sm:$0xff]  }
  0x68   : > { %2049 = vmatprep.subr.bf16.mxu0 %v2620_v0  ;;  %2069 = vmatprep.subr.bf16.mxu1 %v2620_v0  ;;  %v2399_v2 = vld [vmem:[#allocation2 + $0x40] sm:$0xff]   ;;  %v2401_v4 = vld [vmem:[#allocation2 + $0x48] sm:$0xff]   ;;  %v2402_v5 = vld [vmem:[#allocation2 + $0x10] sm:$0xff]   ;;  %s1838_s13 = sshll.u32 %s2689_s28, 1  ;;  %vm1017_vm1 = vcmask 392192   ;;  %vm1103_vm2 = vcmask 261120  }
  0x69   : > { %2065 = vmatprep.mubr.msk.bf16.mxu0 %vm2621_vm0, %v2620_v0  ;;  %2085 = vmatprep.mubr.msk.bf16.mxu1 %vm2621_vm0, %v2620_v0  ;;  %v2403_v6 = vld [vmem:[#allocation2 + $0x50] sm:$0xff]   ;;  %v2404_v7 = vld [vmem:[#allocation2 + $0x18] sm:$0xff]   ;;  %p318_p12 = scmp.lt.s32.totalorder %s1838_s13, 3  ;;  %v2406_v9 = vld [vmem:[#allocation2 + $0x20] sm:$0xff]   ;;  %s2622_s29 = smov 16   ;;  %vm1324_vm7 = vcmask 1043456  }
  0x6a   : > { %2050 = vmatpush3.bf16.msra.mxu0 %v2398_v1  ;;  %2070 = vmatpush3.bf16.msra.mxu1 %v2399_v2  ;;  %v2405_v8 = vld [vmem:[#allocation2 + $0x58] sm:$0xff]   ;;  %v2407_v10 = vld [vmem:[#allocation2 + $0x60] sm:$0xff]   ;;  %v2408_v11 = vld [vmem:[#allocation2 + $0x28] sm:$0xff]   ;;  %s2623_s15 = smov 112   ;;  %vm1317_vm8 = vcmask 64512   ;;  %s314_s21 = sand.u32 1, %s2603_s25  }
  0x6b   : > { %2051 = vmatprep.subr.bf16.mxu0 %v2620_v0  ;;  %2071 = vmatprep.subr.bf16.mxu1 %v2620_v0  ;;  %s3083_s13 = smov (!%p318_p12, %s1838_s13), 3  ;;  %v2409_v12 = vld [vmem:[#allocation2 + $0x68] sm:$0xff]   ;;  %v2410_v13 = vld [vmem:[#allocation2 + $0x30] sm:$0xff]   ;;  %v2412_v15 = vld [vmem:[#allocation2 + $0x38] sm:$0xff]   ;;  %s1837_s22 = sshll.u32 %s314_s21, 6 }
  0x6c   : > { %s1839_s16 = sshll.u32 %s3083_s13, 2  ;;  %v2411_v14 = vld [vmem:[#allocation2 + $0x70] sm:$0xff]   ;;  %v2413_v18 = vld [vmem:[#allocation2 + $0x78] sm:$0xff]   ;;  %v2415_v20 = vld [vmem:[#allocation2 + $0x80] sm:$0xff]   ;;  %s316_s26 = scalar_lea.vmem [#allocation8], %s1837_s22 }
  0x6d   : > { %s321_s30 = scalar_lea.vmem %s3044_s0, %s1839_s16  ;;  %v2416_v21 = vld [vmem:[#allocation2 + $0xc0] sm:$0xff]   ;;  %v2417_v22 = vld [vmem:[#allocation2 + $0x88] sm:$0xff]   ;;  %v2419_v24 = vld [vmem:[#allocation2 + $0x90] sm:$0xff]   ;;  %s1734_s13 = sshll.u32 %s316_s26, 4  ;;  %s2994_s13 = int_to_ptr.vmem [resolvable:$true] %s1734_s13 }
  0x6e   : > { %2052 = vmatpush3.bf16.msra.mxu0 %v2400_v3  ;;  %2072 = vmatpush3.bf16.msra.mxu1 %v2401_v4  ;;  %v2838_v16 = vld [vmem:[%s321_s30] sm:$0xf]  ;;  %v2840_v17 = vld [vmem:[%s321_s30 + $0x4] sm:$0xf]  ;;  %v2418_v23 = vld [vmem:[#allocation2 + $0xc8] sm:$0xff]   ;;  %s1954_s16 = sshll.u32 %s2689_s28, 10 }
  0x6f   : > { %2053 = vmatprep.subr.bf16.mxu0 %v2620_v0  ;;  %2073 = vmatprep.subr.bf16.mxu1 %v2620_v0  ;;  %v2846_v19 = vcombine.low %v2838_v16, %v2840_v17  ;;  %v2420_v25 = vld [vmem:[#allocation2 + $0xd0] sm:$0xff]   ;;  %v2421_v26 = vld [vmem:[#allocation2 + $0x98] sm:$0xff]   ;;  %v2423_v28 = vld [vmem:[#allocation2 + $0xa0] sm:$0xff]   ;;  %s2999_s28 = scalar_lea.hbm %s3051_s7, %s1954_s16  ;;  %s3003_s30 = scalar_lea.sflag [#allocation4], %s314_s21 }
  0x70   : > { %v2422_v27 = vld [vmem:[#allocation2 + $0xd8] sm:$0xff]   ;;  %v2424_v29 = vld [vmem:[#allocation2 + $0xe0] sm:$0xff]   ;;  %v2425_v30 = vld [vmem:[#allocation2 + $0xa8] sm:$0xff]   ;;  %s2541_s10 = scalar_lea.vmem %s2994_s13, 1024  ;;  %p3075_p7 = scmp.ne.s32.totalorder %s3061_s11, 0 }
  0x71   : > { %v2426_v31 = vld [vmem:[#allocation2 + $0xe8] sm:$0xff]   ;;  %v2427_v32 = vld [vmem:[#allocation2 + $0xb0] sm:$0xff]   ;;  %v2429_v34 = vld [vmem:[#allocation2 + $0xb8] sm:$0xff]   ;;  %p2542_p4 = scmp.ne.s32.totalorder %s2994_s13, %s2541_s10  ;;  %s2625_s23 = smov [#allocation8]  }
  0x72   : > { %2054 = vmatpush3.bf16.msra.mxu0 %v2402_v5  ;;  %2074 = vmatpush3.bf16.msra.mxu1 %v2403_v6  ;;  %v2428_v33 = vld [vmem:[#allocation2 + $0xf0] sm:$0xff]   ;;  %v2430_v35 = vld [vmem:[#allocation2 + $0xf8] sm:$0xff]   ;;  %v2431_v36 = vld [vmem:[#allocation2 + $0x100] sm:$0xff]  }
  0x73   : > { %2055 = vmatprep.subr.bf16.mxu0 %v2620_v0  ;;  %2075 = vmatprep.subr.bf16.mxu1 %v2620_v0  ;;  %v2432_v37 = vld [vmem:[#allocation2 + $0x140] sm:$0xff]   ;;  %v2433_v38 = vld [vmem:[#allocation2 + $0x108] sm:$0xff]   ;;  %v2435_v40 = vld [vmem:[#allocation2 + $0x110] sm:$0xff]   ;;  %p2543_p8 = pnand %p2542_p4, %p3075_p7 }
  0x74   : > { %v2434_v39 = vld [vmem:[#allocation2 + $0x148] sm:$0xff]   ;;  %v2436_v41 = vld [vmem:[#allocation2 + $0x150] sm:$0xff]   ;;  %v2437_v42 = vld [vmem:[#allocation2 + $0x118] sm:$0xff]  }
  0x75   : > { %v2438_v43 = vld [vmem:[#allocation2 + $0x158] sm:$0xff]   ;;  %v2439_v44 = vld [vmem:[#allocation2 + $0x120] sm:$0xff]   ;;  %v2441_v46 = vld [vmem:[#allocation2 + $0x128] sm:$0xff]   ;;  %p2544_p11 = pneg %p2543_p8 }
  0x76   : > { %2056 = vmatpush3.bf16.msra.mxu0 %v2404_v7  ;;  %2076 = vmatpush3.bf16.msra.mxu1 %v2405_v8  ;;  %v2440_v45 = vld [vmem:[#allocation2 + $0x160] sm:$0xff]   ;;  %v2442_v47 = vld [vmem:[#allocation2 + $0x168] sm:$0xff]   ;;  %v2443_v48 = vld [vmem:[#allocation2 + $0x130] sm:$0xff]  }
  0x77   : > { %2057 = vmatprep.subr.bf16.mxu0 %v2620_v0  ;;  %2077 = vmatprep.subr.bf16.mxu1 %v2620_v0  ;;  %v2444_v49 = vld [vmem:[#allocation2 + $0x170] sm:$0xff]   ;;  %v2445_v50 = vld [vmem:[#allocation2 + $0x138] sm:$0xff]   ;;  %v2447_v52 = vld [vmem:[#allocation5] sm:$0xff]  }
  0x78   : > { %v2446_v51 = vld [vmem:[#allocation2 + $0x178] sm:$0xff]  }
  0x7a   : > { %2058 = vmatpush3.bf16.msra.mxu0 %v2406_v9  ;;  %2078 = vmatpush3.bf16.msra.mxu1 %v2407_v10 }
  0x7b   : > { %2059 = vmatprep.subr.bf16.mxu0 %v2620_v0  ;;  %2079 = vmatprep.subr.bf16.mxu1 %v2620_v0 }
  0x7e   : > { %2060 = vmatpush3.bf16.msra.mxu0 %v2408_v11  ;;  %2080 = vmatpush3.bf16.msra.mxu1 %v2409_v12 }
  0x7f   : > { %2061 = vmatprep.subr.bf16.mxu0 %v2620_v0  ;;  %2081 = vmatprep.subr.bf16.mxu1 %v2620_v0 }
  0x82   : > { %2062 = vmatpush3.bf16.msra.mxu0 %v2410_v13  ;;  %2082 = vmatpush3.bf16.msra.mxu1 %v2411_v14 }
  0x83   : > { %2063 = vmatprep.subr.bf16.mxu0 %v2620_v0  ;;  %2083 = vmatprep.subr.bf16.mxu1 %v2620_v0 }
  0x86   : > { %2064 = vmatpush3.bf16.msra.mxu0 %v2412_v15  ;;  %2084 = vmatpush3.bf16.msra.mxu1 %v2413_v18 }
  0x87   : > { %2089 = vmatprep.subr.bf16.mxu0 %v2620_v0  ;;  %2109 = vmatprep.subr.bf16.mxu1 %v2620_v0 }
  0x89   : > { %2066 = vmatmul.mubr.bf16.vlgmr.msra.gmra.mrb[0].mxu0 %v2846_v19  ;;  %2086 = vmatmul.mubr.bf16.vlgmr.msra.gmra.mrb[0].mxu1 %v2846_v19 }
  0x8a   : > { %2090 = vmatpush3.bf16.msra.mxu0 %v2415_v20  ;;  %2110 = vmatpush3.bf16.msra.mxu1 %v2416_v21  ;;  %v2448_v21 = vld [vmem:[#allocation5 + $0x8] sm:$0xff]  }
  0x8b   : > { %2091 = vmatprep.subr.bf16.mxu0 %v2620_v0  ;;  %2111 = vmatprep.subr.bf16.mxu1 %v2620_v0 }
  0x8c   : > { %2105 = vmatprep.mubr.msk.bf16.mxu0 %vm2621_vm0, %v2620_v0  ;;  %2125 = vmatprep.mubr.msk.bf16.mxu1 %vm2621_vm0, %v2620_v0 }
  0x8e   : > { %2092 = vmatpush3.bf16.msra.mxu0 %v2417_v22  ;;  %2112 = vmatpush3.bf16.msra.mxu1 %v2418_v23  ;;  %v2449_v22 = vld [vmem:[%s3048_s4 + $0x10] sm:$0xff]   ;;  %v974_v23 = vld [vmem:[#allocation7 + $0x10] sm:$0xff] }
  0x8f   : > { %2093 = vmatprep.subr.bf16.mxu0 %v2620_v0  ;;  %2113 = vmatprep.subr.bf16.mxu1 %v2620_v0 }
  0x92   : > { %2094 = vmatpush3.bf16.msra.mxu0 %v2419_v24  ;;  %2114 = vmatpush3.bf16.msra.mxu1 %v2420_v25  ;;  %v972_v24 = vld [vmem:[#allocation7] sm:$0xff] }
  0x93   : > { %2095 = vmatprep.subr.bf16.mxu0 %v2620_v0  ;;  %2115 = vmatprep.subr.bf16.mxu1 %v2620_v0 }
  0x96   : > { %2096 = vmatpush3.bf16.msra.mxu0 %v2421_v26  ;;  %2116 = vmatpush3.bf16.msra.mxu1 %v2422_v27  ;;  %v975_v26 = vld [vmem:[#allocation7 + $0x18] sm:$0xff] }
  0x97   : > { %2097 = vmatprep.subr.bf16.mxu0 %v2620_v0  ;;  %2117 = vmatprep.subr.bf16.mxu1 %v2620_v0 }
  0x9a   : > { %2098 = vmatpush3.bf16.msra.mxu0 %v2423_v28  ;;  %2118 = vmatpush3.bf16.msra.mxu1 %v2424_v29  ;;  %v973_v29 = vld [vmem:[#allocation7 + $0x8] sm:$0xff] }
  0x9b   : > { %2099 = vmatprep.subr.bf16.mxu0 %v2620_v0  ;;  %2119 = vmatprep.subr.bf16.mxu1 %v2620_v0 }
  0x9e   : > { %2100 = vmatpush3.bf16.msra.mxu0 %v2425_v30  ;;  %2120 = vmatpush3.bf16.msra.mxu1 %v2426_v31 }
  0x9f   : > { %2101 = vmatprep.subr.bf16.mxu0 %v2620_v0  ;;  %2121 = vmatprep.subr.bf16.mxu1 %v2620_v0 }
  0xa2   : > { %2102 = vmatpush3.bf16.msra.mxu0 %v2427_v32  ;;  %2122 = vmatpush3.bf16.msra.mxu1 %v2428_v33 }
  0xa3   : > { %2103 = vmatprep.subr.bf16.mxu0 %v2620_v0  ;;  %2123 = vmatprep.subr.bf16.mxu1 %v2620_v0 }
  0xa6   : > { %2104 = vmatpush3.bf16.msra.mxu0 %v2429_v34  ;;  %2124 = vmatpush3.bf16.msra.mxu1 %v2430_v35 }
  0xa7   : > { %2129 = vmatprep.subr.bf16.mxu0 %v2620_v0  ;;  %2149 = vmatprep.subr.bf16.mxu1 %v2620_v0 }
  0xa9   : > { %2106 = vmatmul.mubr.bf16.vlgmr.msra.gmra.mrb[4].mxu0 %v2846_v19  ;;  %2126 = vmatmul.mubr.bf16.vlgmr.msra.gmra.mrb[4].mxu1 %v2846_v19 }
  0xaa   : > { %2130 = vmatpush3.bf16.msra.mxu0 %v2431_v36  ;;  %2150 = vmatpush3.bf16.msra.mxu1 %v2432_v37 }
  0xab   : > { %2131 = vmatprep.subr.bf16.mxu0 %v2620_v0  ;;  %2151 = vmatprep.subr.bf16.mxu1 %v2620_v0 }
  0xac   : > { %2145 = vmatprep.mubr.msk.bf16.mxu0 %vm2621_vm0, %v2620_v0  ;;  %2165 = vmatprep.mubr.msk.bf16.mxu1 %vm2621_vm0, %v2620_v0 }
  0xae   : > { %2132 = vmatpush3.bf16.msra.mxu0 %v2433_v38  ;;  %2152 = vmatpush3.bf16.msra.mxu1 %v2434_v39 }
  0xaf   : > { %2133 = vmatprep.subr.bf16.mxu0 %v2620_v0  ;;  %2153 = vmatprep.subr.bf16.mxu1 %v2620_v0 }
  0xb2   : > { %2134 = vmatpush3.bf16.msra.mxu0 %v2435_v40  ;;  %2154 = vmatpush3.bf16.msra.mxu1 %v2436_v41 }
  0xb3   : > { %2135 = vmatprep.subr.bf16.mxu0 %v2620_v0  ;;  %2155 = vmatprep.subr.bf16.mxu1 %v2620_v0 }
  0xb6   : > { %2136 = vmatpush3.bf16.msra.mxu0 %v2437_v42  ;;  %2156 = vmatpush3.bf16.msra.mxu1 %v2438_v43 }
  0xb7   : > { %2137 = vmatprep.subr.bf16.mxu0 %v2620_v0  ;;  %2157 = vmatprep.subr.bf16.mxu1 %v2620_v0 }
  0xba   : > { %2138 = vmatpush3.bf16.msra.mxu0 %v2439_v44  ;;  %2158 = vmatpush3.bf16.msra.mxu1 %v2440_v45 }
  0xbb   : > { %2139 = vmatprep.subr.bf16.mxu0 %v2620_v0  ;;  %2159 = vmatprep.subr.bf16.mxu1 %v2620_v0 }
  0xbe   : > { %2140 = vmatpush3.bf16.msra.mxu0 %v2441_v46  ;;  %2160 = vmatpush3.bf16.msra.mxu1 %v2442_v47 }
  0xbf   : > { %2141 = vmatprep.subr.bf16.mxu0 %v2620_v0  ;;  %2161 = vmatprep.subr.bf16.mxu1 %v2620_v0 }
  0xc2   : > { %2142 = vmatpush3.bf16.msra.mxu0 %v2443_v48  ;;  %2162 = vmatpush3.bf16.msra.mxu1 %v2444_v49 }
  0xc3   : > { %2143 = vmatprep.subr.bf16.mxu0 %v2620_v0  ;;  %2163 = vmatprep.subr.bf16.mxu1 %v2620_v0 }
  0xc6   : > { %2144 = vmatpush3.bf16.msra.mxu0 %v2445_v50  ;;  %2164 = vmatpush3.bf16.msra.mxu1 %v2446_v51 }
  0xc9   : > { %2146 = vmatmul.mubr.bf16.vlgmr.msra.gmra.mrb[8].mxu0 %v2846_v19  ;;  %2166 = vmatmul.mubr.bf16.vlgmr.msra.gmra.mrb[8].mxu1 %v2846_v19 }
  0xca   : > { %2175 = vmatprep.mubr.msk.bf16.mxu1 %vm1017_vm1, %v2447_v52  ;;  %2215 = vmatprep.mubr.msk.bf16.mxu0 %vm1017_vm1, %v2447_v52 }
 0x15c   : > { %v431_v53 = vpop.f32.mrb[0].mxu0  ;;  %v537_v54 = vpop.f32.mrb[0].mxu1 }
 0x15d   : > { %v2067_v55 = vpop.f32.mrb[1].mxu0  ;;  %v1004_v56 = vpack.c.bf16 %v537_v54, %v431_v53  ;;  %v2087_v57 = vpop.f32.mrb[1].mxu1 }
 0x15e   : > { %v434_v58 = vpop.f32.mrb[2].mxu0  ;;  %v540_v59 = vpop.f32.mrb[2].mxu1 }
 0x15f   : > { %v2068_v60 = vpop.f32.mrb[3].mxu0  ;;  %v1413_v61 = vpack.c.bf16 %v540_v59, %v434_v58  ;;  %v2088_v62 = vpop.f32.mrb[3].mxu1  ;;  %2169 = vmatprep.subr.bf16.mxu1 %v1004_v56  ;;  %v2450_v59 = vld [vmem:[%s3048_s4 + $0x18] sm:$0xff]  }
 0x160   : > { %2170 = vmatpush3.bf16.msra.mxu1 %v1004_v56  ;;  %v2451_v60 = vld [vmem:[%s3048_s4] sm:$0xff]  }
 0x161   : > { %2209 = vmatprep.subr.bf16.mxu0 %v1413_v61  ;;  %v992_v62 = vld [vmem:[%s3050_s6] sm:$0xff] }
 0x162   : > { %2210 = vmatpush3.bf16.msra.mxu0 %v1413_v61  ;;  %v993_v61 = vld [vmem:[%s3050_s6 + $0x8] sm:$0xff] }
 0x17c   : > { %v643_v63 = vpop.f32.mrb[4].mxu0  ;;  %v749_v0 = vpop.f32.mrb[4].mxu1 }
 0x17d   : > { %v2107_v1 = vpop.f32.mrb[5].mxu0  ;;  %v1005_v2 = vpack.c.bf16 %v749_v0, %v643_v63  ;;  %v2127_v3 = vpop.f32.mrb[5].mxu1  ;;  %v2624_v63 = vmov 0   ;;  %v994_v0 = vld [vmem:[%s3050_s6 + $0x10] sm:$0xff] }
 0x17e   : > { %v646_v4 = vpop.f32.mrb[6].mxu0  ;;  %v752_v5 = vpop.f32.mrb[6].mxu1  ;;  %2397 = vset.pattern.permute.xlu1 %v2624_v63  ;;  %2396 = vset.pattern.permute.xlu0 %v2624_v63  ;;  %v995_v1 = vld [vmem:[%s3050_s6 + $0x18] sm:$0xff] }
 0x17f   : > { %v2108_v6 = vpop.f32.mrb[7].mxu0  ;;  %v1414_v7 = vpack.c.bf16 %v752_v5, %v646_v4  ;;  %v2128_v8 = vpop.f32.mrb[7].mxu1  ;;  %2171 = vmatprep.subr.bf16.mxu1 %v1005_v2 }
 0x180   : > { %2172 = vmatpush3.bf16.msra.mxu1 %v1005_v2  ;;  %v996_v2 = vlaneseq }
 0x181   : > { %2211 = vmatprep.subr.bf16.mxu0 %v1414_v7 }
 0x182   : > { %2212 = vmatpush3.bf16.msra.mxu0 %v1414_v7  ;;  %v997_v3 = vand.u32 127, %v996_v2 }
 0x184   : > { %vm998_vm3 = vcmp.ge.s32.totalorder %v997_v3, 16  ;;  %vm1002_vm5 = vcmp.lt.s32.totalorder %v997_v3, 112 }
 0x185   : > { %vm2925_vm4 = vmpackc.low %vm998_vm3, %vm998_vm3 }
 0x186   : > { %vm2944_vm6 = vmpackc.low %vm1002_vm5, %vm1002_vm5 }
 0x19c   : > { %v855_v9 = vpop.f32.mrb[8].mxu0  ;;  %v961_v10 = vpop.f32.mrb[8].mxu1 }
 0x19d   : > { %v2147_v11 = vpop.f32.mrb[9].mxu0  ;;  %v1006_v12 = vpack.c.bf16 %v961_v10, %v855_v9  ;;  %v2167_v13 = vpop.f32.mrb[9].mxu1 }
 0x19e   : > { %v858_v14 = vpop.f32.mrb[10].mxu0  ;;  %v964_v15 = vpop.f32.mrb[10].mxu1 }
 0x19f   : > { %v2148_v18 = vpop.f32.mrb[11].mxu0  ;;  %v1415_v19 = vpack.c.bf16 %v964_v15, %v858_v14  ;;  %v2168_v20 = vpop.f32.mrb[11].mxu1  ;;  %2173 = vmatprep.subr.bf16.mxu1 %v1006_v12 }
 0x1a0   : > { %2174 = vmatpush3.bf16.msra.mxu1 %v1006_v12 }
 0x1a1   : > { %2213 = vmatprep.subr.bf16.mxu0 %v1415_v19 }
 0x1a2   : > { %2214 = vmatpush3.bf16.msra.mxu0 %v1415_v19 }
 0x1a3   : > { %2176 = vmatmul.mubr.msk.bf16.vlgmr.msra.gmra.mrb[12].mxu1 %vm1017_vm1, %v2448_v21 }
 0x1a4   : > { %2183 = vmatprep.mubr.msk.bf16.mxu1 %vm1103_vm2, %v2449_v22 }
 0x1a5   : > { %2216 = vmatmul.mubr.msk.bf16.vlgmr.msra.gmra.mrb[12].mxu0 %vm1017_vm1, %v2448_v21 }
 0x1a6   : > { %2223 = vmatprep.mubr.msk.bf16.mxu0 %vm1103_vm2, %v2449_v22 }
 0x276   : > { %v2177_v25 = vpop.f32.mrb[12].mxu1 }
 0x277   : > { %v1067_v27 = vadd.f32 %v2177_v25, %v974_v23  ;;  %v1058_v28 = vpop.f32.mrb[13].mxu1 }
 0x278   : > { %v1059_v30 = vadd.f32 %v1058_v28, %v972_v24  ;;  %v2178_v31 = vpop.f32.mrb[14].mxu1  ;;  %v2217_v32 = vpop.f32.mrb[12].mxu0 }
 0x279   : > { %v1070_v33 = vadd.f32 %v2178_v31, %v975_v26  ;;  %v1459_v34 = vadd.f32 %v2217_v32, %v974_v23  ;;  %v1061_v35 = vpop.f32.mrb[15].mxu1  ;;  %v1450_v36 = vpop.f32.mrb[13].mxu0  ;;  %v1075_v40 = vmax.f32 %v1067_v27, 0.0 }
 0x27a   : > { %v1062_v37 = vadd.f32 %v1061_v35, %v973_v29  ;;  %v1451_v38 = vadd.f32 %v1450_v36, %v972_v24  ;;  %v2218_v39 = vpop.f32.mrb[14].mxu0  ;;  %v1073_v45 = vmax.f32 %v1059_v30, 0.0 }
 0x27b   : > { %v1076_v41 = vmax.f32 %v1070_v33, 0.0  ;;  %v1467_v42 = vmax.f32 %v1459_v34, 0.0  ;;  %v1462_v43 = vadd.f32 %v2218_v39, %v975_v26  ;;  %v1453_v44 = vpop.f32.mrb[15].mxu0  ;;  %v2453_v33 = vld [vmem:[%s3048_s4 + $0x20] sm:$0xff]  }
 0x27c   : > { %v1074_v46 = vmax.f32 %v1062_v37, 0.0  ;;  %v1465_v47 = vmax.f32 %v1451_v38, 0.0  ;;  %v1454_v48 = vadd.f32 %v1453_v44, %v973_v29  ;;  %v2452_v29 = vld [vmem:[%s3048_s4 + $0x8] sm:$0xff]   ;;  %v1326_v44 = vsel %vm1324_vm7, %v2838_v16, 0 }
 0x27d   : > { %v1468_v49 = vmax.f32 %v1462_v43, 0.0  ;;  %v2366_v50 = vpack.i.bf16 %v1076_v41, %v1075_v40  ;;  %v1092_v51 = vpack.c.bf16 %v1076_v41, %v1075_v40  ;;  %v2455_v43 = vld [vmem:[%s3049_s5] sm:$0xff]  }
 0x27e   : > { %v1466_v52 = vmax.f32 %v1454_v48, 0.0  ;;  %v2356_v53 = vpack.i.bf16 %v1074_v46, %v1073_v45  ;;  %v1091_v54 = vpack.c.bf16 %v1074_v46, %v1073_v45  ;;  %v1651_v45 = vsel %vm1324_vm7, %v2840_v17, 0  ;;  %v2456_v46 = vld [vmem:[%s3049_s5 + $0x8] sm:$0xff]  }
 0x27f   : > { %2367 = vrot.lane.b32.xlu1 %v2366_v50, %s2622_s29  ;;  %v2371_v55 = vpack.i.bf16 %v1468_v49, %v1467_v42  ;;  %v1484_v56 = vpack.c.bf16 %v1468_v49, %v1467_v42  ;;  %v2454_v42 = vld [vmem:[%s3048_s4 + $0x28] sm:$0xff]  }
 0x280   : > { %2357 = vrot.lane.b32.xlu0 %v2356_v53, %s2622_s29  ;;  %2179 = vmatprep.subr.bf16.mxu1 %v1091_v54  ;;  %v1483_v57 = vpack.c.bf16 %v1466_v52, %v1465_v47  ;;  %v2361_v58 = vpack.i.bf16 %v1466_v52, %v1465_v47 }
 0x281   : > { %2180 = vmatpush3.bf16.msra.mxu1 %v1091_v54 }
 0x282   : > { %2181 = vmatprep.subr.bf16.mxu1 %v1092_v51  ;;  %2219 = vmatprep.subr.bf16.mxu0 %v1483_v57 }
 0x283   : > { %2372 = vrot.lane.b32.xlu1 %v2371_v55, %s2622_s29  ;;  %2220 = vmatpush3.bf16.msra.mxu0 %v1483_v57 }
 0x284   : > { %2362 = vrot.lane.b32.xlu0 %v2361_v58, %s2622_s29  ;;  %2221 = vmatprep.subr.bf16.mxu0 %v1484_v56  ;;  %s2545_s29 = sshll.u32 %s2625_s23, 4  ;;  %s2546_s29 = int_to_ptr.vmem [resolvable:$false] %s2545_s29 }
 0x285   : > { %2182 = vmatpush3.bf16.msra.mxu1 %v1092_v51  ;;  %s2547_s8 = scalar_lea.vmem %s2546_s29, 2048  ;;  %p2548_p13 = scmp.lt.s32.totalorder %s2994_s13, %s2546_s29 }
 0x286   : > { %p2549_p1 = scmp.lt.s32.totalorder %s2547_s8, %s2541_s10 }
 0x287   : > { %2387 = vrot.lane.b32.xlu1 %v2361_v58, %s2623_s15  ;;  %2222 = vmatpush3.bf16.msra.mxu0 %v1484_v56 }
 0x288   : > { %2377 = vrot.lane.b32.xlu0 %v2356_v53, %s2623_s15  ;;  %2184 = vmatmul.mubr.msk.bf16.vlgmr.msra.gmra.mrb[16].mxu1 %vm1103_vm2, %v2450_v59  ;;  %p2550_p6 = por %p2549_p1, %p2548_p13 }
 0x289   : > { %2191 = vmatprep.mubr.msk.bf16.mxu1 %vm1103_vm2, %v2451_v60 }
 0x28a   : > { %2224 = vmatmul.mubr.msk.bf16.vlgmr.msra.gmra.mrb[16].mxu0 %vm1103_vm2, %v2450_v59  ;;  %p2551_p9 = pnand %p2550_p6, %p2544_p11 }
 0x28b   : > { %2392 = vrot.lane.b32.xlu1 %v2371_v55, %s2623_s15  ;;  %2231 = vmatprep.mubr.msk.bf16.mxu0 %vm1103_vm2, %v2451_v60 }
 0x28c   : > { %2382 = vrot.lane.b32.xlu0 %v2366_v50, %s2623_s15 }
 0x28f   : > { %1388 = vperm.xlu1 %2397, %v993_v61  }
 0x290   : > { %1383 = vperm.xlu0 %2396, %v992_v62  }
 0x293   : > { %1393 = vperm.xlu1 %2397, %v994_v0  }
 0x294   : > { %1398 = vperm.xlu0 %2396, %v995_v1  }
 0x2f1   : > { %v2368_v4 = vpop.permute.xlu1 %2367 }
 0x2f2   : > { %v2370_v5 = vunpack.i.h.bf16 %v2368_v4  ;;  %v2369_v6 = vunpack.i.l.bf16 %v2368_v4  ;;  %v2358_v7 = vpop.permute.xlu0 %2357 }
 0x2f3   : > { %v2360_v8 = vunpack.i.h.bf16 %v2358_v7  ;;  %v2359_v9 = vunpack.i.l.bf16 %v2358_v7 }
 0x2f4   : > { %v1903_v13 = vpack.c.bf16 %v2370_v5, %v2369_v6 }
 0x2f5   : > { %v1900_v11 = vpack.c.bf16 %v2360_v8, %v2359_v9  ;;  %v2373_v12 = vpop.permute.xlu1 %2372 }
 0x2f6   : > { %v2363_v14 = vpop.permute.xlu0 %2362  ;;  %v2375_v15 = vunpack.i.h.bf16 %v2373_v12  ;;  %v2374_v18 = vunpack.i.l.bf16 %v2373_v12 }
 0x2f7   : > { %v2365_v19 = vunpack.i.h.bf16 %v2363_v14  ;;  %v2364_v20 = vunpack.i.l.bf16 %v2363_v14  ;;  %2187 = vmatprep.subr.msk.bf16.mxu1 %vm2925_vm4, %v1900_v11 }
 0x2f8   : > { %2188 = vmatpush3.bf16.msk.msra.mxu1 %vm2925_vm4, %v1900_v11  ;;  %v1929_v26 = vpack.c.bf16 %v2375_v15, %v2374_v18 }
 0x2f9   : > { %v1926_v21 = vpack.c.bf16 %v2365_v19, %v2364_v20  ;;  %2189 = vmatprep.subr.msk.bf16.mxu1 %vm2925_vm4, %v1903_v13  ;;  %v2388_v22 = vpop.permute.xlu1 %2387 }
 0x2fa   : > { %v2390_v23 = vunpack.i.h.bf16 %v2388_v22  ;;  %v2389_v24 = vunpack.i.l.bf16 %v2388_v22  ;;  %v2378_v25 = vpop.permute.xlu0 %2377 }
 0x2fb   : > { %v2380_v27 = vunpack.i.h.bf16 %v2378_v25  ;;  %v2379_v28 = vunpack.i.l.bf16 %v2378_v25  ;;  %2227 = vmatprep.subr.msk.bf16.mxu0 %vm2925_vm4, %v1926_v21 }
 0x2fc   : > { %2190 = vmatpush3.bf16.msk.msra.mxu1 %vm2925_vm4, %v1903_v13  ;;  %2228 = vmatpush3.bf16.msk.msra.mxu0 %vm2925_vm4, %v1926_v21  ;;  %v1934_v34 = vpack.c.bf16 %v2390_v23, %v2389_v24 }
 0x2fd   : > { %v1910_v31 = vpack.c.bf16 %v2380_v27, %v2379_v28  ;;  %v2393_v32 = vpop.permute.xlu1 %2392  ;;  %2229 = vmatprep.subr.msk.bf16.mxu0 %vm2925_vm4, %v1929_v26 }
 0x2fe   : > { %v2383_v35 = vpop.permute.xlu0 %2382  ;;  %v2395_v36 = vunpack.i.h.bf16 %v2393_v32  ;;  %v2394_v37 = vunpack.i.l.bf16 %v2393_v32 }
 0x2ff   : > { %v2385_v38 = vunpack.i.h.bf16 %v2383_v35  ;;  %v2384_v39 = vunpack.i.l.bf16 %v2383_v35  ;;  %2192 = vmatmul.mubr.msk.bf16.vlgmr.msra.gmra.mrb[16].mxu1 %vm1103_vm2, %v2452_v29  ;;  %2195 = vmatprep.subr.msk.bf16.mxu1 %vm2944_vm6, %v1910_v31 }
 0x300   : > { %2196 = vmatpush3.bf16.msk.msra.mxu1 %vm2944_vm6, %v1910_v31  ;;  %2230 = vmatpush3.bf16.msk.msra.mxu0 %vm2925_vm4, %v1929_v26  ;;  %v1937_v41 = vpack.c.bf16 %v2395_v36, %v2394_v37 }
 0x301   : > { %v1913_v40 = vpack.c.bf16 %v2385_v38, %v2384_v39  ;;  %2235 = vmatprep.subr.msk.bf16.mxu0 %vm2944_vm6, %v1934_v34  ;;  %2199 = vmatprep.mubr.msk.bf16.mxu1 %vm1103_vm2, %v2453_v33 }
 0x303   : > { %2197 = vmatprep.subr.msk.bf16.mxu1 %vm2944_vm6, %v1913_v40  ;;  %2232 = vmatmul.mubr.msk.bf16.vlgmr.msra.gmra.mrb[16].mxu0 %vm1103_vm2, %v2452_v29 }
 0x304   : > { %2198 = vmatpush3.bf16.msk.msra.mxu1 %vm2944_vm6, %v1913_v40  ;;  %2236 = vmatpush3.bf16.msk.msra.mxu0 %vm2944_vm6, %v1934_v34 }
 0x305   : > { %2237 = vmatprep.subr.msk.bf16.mxu0 %vm2944_vm6, %v1937_v41  ;;  %2239 = vmatprep.mubr.msk.bf16.mxu0 %vm1103_vm2, %v2453_v33 }
 0x306   : > { %2273 = vmatprep.subr.msk.bf16.mxu1 %vm1324_vm7, %v2838_v16 }
 0x308   : > { %2238 = vmatpush3.bf16.msk.msra.mxu0 %vm2944_vm6, %v1937_v41 }
 0x309   : > { %2274 = vmatprep.subr.msk.bf16.mxu0 %vm1324_vm7, %v2840_v17 }
 0x30b   : > { %2200 = vmatmul.mubr.msk.bf16.vlgmr.msra.gmra.mrb[16].mxu1 %vm1103_vm2, %v2454_v42 }
 0x30c   : > { %2204 = vmatpush3.bf16.msra.mxu1 %v1326_v44  ;;  %2205 = vmatprep.mubr.msk.bf16.mxu1 %vm1317_vm8, %v2455_v43 }
 0x30e   : > { %v1389_v47 = vpop.permute.xlu1 %1388 }
 0x30f   : > { %2240 = vmatmul.mubr.msk.bf16.vlgmr.msra.gmra.mrb[16].mxu0 %vm1103_vm2, %v2454_v42  ;;  %v1384_v16 = vpop.permute.xlu0 %1383 }
 0x310   : > { %2244 = vmatpush3.bf16.msra.mxu0 %v1651_v45  ;;  %2245 = vmatprep.mubr.msk.bf16.mxu0 %vm1317_vm8, %v2455_v43 }
 0x312   : > { %v1394_v48 = vpop.permute.xlu1 %1393 }
 0x313   : > { %v1399_v50 = vpop.permute.xlu0 %1398 }
 0x317   : > { %2206 = vmatmul.mubr.msk.bf16.vlgmr.msra.gmra.mrb[16].mxu1 %vm1317_vm8, %v2456_v46 }
 0x31b   : > { %2246 = vmatmul.mubr.msk.bf16.vlgmr.msra.gmra.mrb[16].mxu0 %vm1317_vm8, %v2456_v46 }
 0x3ea   : > { %v2207_v49 = vpop.f32.mrb[16].mxu1 }
 0x3eb   : > { %v1403_v51 = vadd.f32 %v2207_v49, %v1394_v48  ;;  %v1362_v17 = vpop.f32.mrb[17].mxu1 }
 0x3ec   : > { %v1401_v52 = vadd.f32 %v1384_v16, %v1362_v17  ;;  %v2208_v53 = vpop.f32.mrb[18].mxu1 }
 0x3ed   : > { %v1407_v54 = vmax.f32 %v1403_v51, 0.0  ;;  %v1404_v55 = vadd.f32 %v2208_v53, %v1399_v50  ;;  %v1365_v56 = vpop.f32.mrb[19].mxu1 }
 0x3ee   : > { %v1405_v57 = vmax.f32 %v1401_v52, 0.0  ;;  %v1402_v58 = vadd.f32 %v1389_v47, %v1365_v56  ;;  %v2247_v59 = vpop.f32.mrb[16].mxu0 }
 0x3ef   : > { %1411 = vst [vmem:[%s316_s26 + $0x10] sm:$0xff] %v1407_v54  ;;  %v1408_v60 = vmax.f32 %v1404_v55, 0.0  ;;  %v1708_v61 = vadd.f32 %v2247_v59, %v1394_v48  ;;  %v1687_v62 = vpop.f32.mrb[17].mxu0 }
 0x3f0   : > { %1409 = vst [vmem:[%s316_s26] sm:$0xff] %v1405_v57  ;;  %v1406_v63 = vmax.f32 %v1402_v58, 0.0  ;;  %v1706_v0 = vadd.f32 %v1687_v62, %v1384_v16  ;;  %v2248_v1 = vpop.f32.mrb[18].mxu0 }
 0x3f1   : > { %1412 = vst [vmem:[%s316_s26 + $0x18] sm:$0xff] %v1408_v60  ;;  %v1712_v2 = vmax.f32 %v1708_v61, 0.0  ;;  %v1709_v3 = vadd.f32 %v2248_v1, %v1399_v50  ;;  %v1690_v4 = vpop.f32.mrb[19].mxu0 }
 0x3f2   : > { %1410 = vst [vmem:[%s316_s26 + $0x8] sm:$0xff] %v1406_v63  ;;  %v1710_v5 = vmax.f32 %v1706_v0, 0.0  ;;  %v1707_v6 = vadd.f32 %v1690_v4, %v1389_v47 }
 0x3f3   : > { %1945 = vst [vmem:[%s316_s26 + $0x30] sm:$0xff] %v1712_v2  ;;  %v1713_v7 = vmax.f32 %v1709_v3, 0.0 }
 0x3f4   : > { %1943 = vst [vmem:[%s316_s26 + $0x20] sm:$0xff] %v1710_v5  ;;  %v1711_v8 = vmax.f32 %v1707_v6, 0.0 }
 0x3f5   : > { %1946 = vst [vmem:[%s316_s26 + $0x38] sm:$0xff] %v1713_v7 }
 0x3f6   : > { %1944 = vst [vmem:[%s316_s26 + $0x28] sm:$0xff] %v1711_v8 }
 0x3f7   : > { %2554 = shalt.err (!%p2551_p9)
}
 0x3f8   : > { %s2555_s14 = scalar_lea.hbm %s2999_s28, 1024  ;;  %s2559_s15 = scalar_lea.hbm %s3051_s7, 2048 }
 0x3f9   : > { %p2556_p2 = scmp.ne.s32.totalorder %s2999_s28, %s2555_s14  ;;  %p2560_p5 = scmp.lt.u32.totalorder %s2999_s28, %s3051_s7 }
 0x3fa   : > { %p2561_p10 = scmp.lt.u32.totalorder %s2559_s15, %s2555_s14  ;;  %p2563_p4 = scmp.lt.u32.totalorder %s2555_s14, %s2999_s28 }
 0x3fb   : > { %p2557_p3 = pnand %p2556_p2, %p3075_p7 }
 0x3fc   : > { %p2562_p12 = por %p2561_p10, %p2560_p5 }
 0x3fd   : > { %p2558_p0 = pneg %p2557_p3 }
 0x3fe   : > { %p2564_p8 = por %p2563_p4, %p2562_p12 }
 0x400   : > { %p2565_p11 = pnand %p2564_p8, %p2558_p0 }
 0x402   : > { %2568 = shalt.err (!%p2565_p11)
}
 0x403   : > { %s2626_s22 = smov 128   ;;  %s2627_s26 = smov 8  }
 0x404   : > { %2287 = dma.vmem_to_hbm [thread:$0]  (%p3075_p7), %s2994_s13, 1024, %s2999_s28, %s3003_s30, %s2626_s22, %s2626_s22, %s2627_s26  }
 0x405 PF: > { %p2309_p13 = scmp.ge.s32.totalorder %s2611_s27, 2  ;;  %s1749_s16 = sand.u32 1, %s2599_s24  }
 0x406   : > { %p3076_p1 = scmp.ne.s32.totalorder %s3062_s12, 0  ;;  %s1750_s20 = scalar_lea.sflag [#allocation4], %s1749_s16 }
 0x408   : > { %p2300_p6 = pnand %p2309_p13, %p3076_p1 }
 0x40a   : > { %2594 = dma.done.wait (!%p2300_p6), %s1750_s20, 1024  }
 0x40b   : > { %2596 = vsyncadd (!%p2300_p6), %s1750_s20, 4294966272  ;;  %s3077_s27 = sld [smem:[#allocation13_spill]]  ;;  %s3078_s9 = sld [smem:[#allocation12_spill]] }
 0x40c   : > { %s3079_s26 = sld [smem:[#allocation14_spill]]  ;;  %s3080_s24 = smov %s2603_s25 }
 0x411   : > { %p19_p9 = scmp.ge.s32.totalorder %s3077_s27, 4   ;;  %s3081_s25 = smov %s3078_s9 }
 0x413   :  { %21 = sbr.rel (!%p19_p9) target bundleno = 5 (0x5), region = 102 }
 0x41a   :  { %1755 = vsyncpa [#allocation3], 1 }
 0x41b   :  { %1757 = vsyncpa [#allocation3 + $0x1], 1 }
 0x41c   :  { %1758 = vsyncpa [#allocation6], 1 }
 0x41d   :  { %1759 = vsyncpa [#allocation4], 1 }
 0x41e   :  { %1761 = vsyncpa [#allocation4 + $0x1], 1 }

</bundles_post_ra>
